<compile_context>
chip_gen: v5e
topology: v5e:2x2
jax: 0.10.0
libtpu: 0.0.40
codegen_flags: <defaults>
</compile_context>

<pallas_src>
import functools

import jax
import jax.numpy as jnp
import numpy as np
from jax.experimental import pallas as pl
from jax.experimental.pallas import tpu as pltpu


# ----------------------------------------------------------------------------
# Model configuration (matches the PyTorch module instantiation)
# ----------------------------------------------------------------------------
LSTM_LAYERS = 1
LSTM_H = 32
HIDDEN_LAYERS = [32]
HIDDEN_ACT = "relu"
MARKET_LSTM_LAYERS = 1
MARKET_LSTM_H = 32
MARKET_HIDDEN_LAYERS = [16]
MARKET_ACT = "relu"
DROPOUT = 0.0            # eval-mode / identity
LAYER_NORM = False       # disabled in this configuration
INPUT_SIZE = 49
MARKET_DATA_SIZE = 21
OUTPUT_SIZE = 37


def _apply_act(y, act):
    if act == "relu":
        return jnp.maximum(y, 0.0)
    if act == "tanh":
        return jnp.tanh(y)
    if act == "sigmoid":
        return jax.nn.sigmoid(y)
    if act == "leaky_relu":
        return jnp.where(y >= 0, y, 0.01 * y)
    if act == "elu":
        return jnp.where(y >= 0, y, jnp.expm1(y))
    return y


# ----------------------------------------------------------------------------
# Pallas kernel: BOTH branches (LSTM stack -> last hidden -> MLP head), fused
# via block-diagonal weights.
# ----------------------------------------------------------------------------
def fused_branches_kernel(*refs, T, Bp, HC, act, n_lstm, n_mlp):
    """refs layout (all whole-array VMEM blocks):
      refs[0]                 : x_flat (T*Bp, Din_comb)  time-major, feature-concat
      next 3*n_lstm refs      : per layer Wih (Din,4HC), Whh (HC,4HC), b (1,4HC)
      next 2*n_mlp refs       : per MLP layer  W (Din,Dout), b (1,Dout)
      refs[-1]                : output (Bp, out_cols)  lane-dense slab
    Combined gate column order: [i_n i_m | f_n f_m | g_n g_m | o_n o_m],
    combined hidden layout: [h_n | h_m] (width HC).
    """
    x_ref = refs[0]
    lstm_refs = refs[1:1 + 3 * n_lstm]
    mlp_refs = refs[1 + 3 * n_lstm:1 + 3 * n_lstm + 2 * n_mlp]
    o_ref = refs[-1]

    cur = x_ref[...]                                        # (T*Bp, Din)
    h = None
    for l in range(n_lstm):
        wih = lstm_refs[3 * l][...]                         # (Din, 4HC)
        whh = lstm_refs[3 * l + 1][...]                     # (HC, 4HC)
        b = lstm_refs[3 * l + 2][...]                       # (1, 4HC)

        # Hoisted, lane-dense input projection over all time steps at once.
        xp = jnp.dot(cur, wih, preferred_element_type=jnp.float32) + b   # (T*Bp, 4HC)

        h = jnp.zeros((Bp, HC), jnp.float32)
        c = jnp.zeros((Bp, HC), jnp.float32)
        hs = []
        # Serial recurrence, fully unrolled in-trace (T small & static).
        for t in range(T):
            gates = xp[t * Bp:(t + 1) * Bp, :] + jnp.dot(
                h, whh, preferred_element_type=jnp.float32)              # (Bp, 4HC)
            sig = jax.nn.sigmoid(gates)     # full-width EUP pass
            tnh = jnp.tanh(gates)           # full-width EUP pass
            c = sig[:, HC:2 * HC] * c + sig[:, :HC] * tnh[:, 2 * HC:3 * HC]
            h = sig[:, 3 * HC:] * jnp.tanh(c)
            if l < n_lstm - 1:
                hs.append(h)
        if l < n_lstm - 1:
            # TODO(synk): if n_lstm > 1 is ever enabled, write rows into a
            # preallocated VMEM scratch instead of this in-trace concat.
            cur = jnp.concatenate(hs, axis=0)               # (T*Bp, HC) time-major

    # Block-diagonal MLP heads on the final combined hidden state.
    y = h                                                   # (Bp, HC)
    for m in range(n_mlp):
        w = mlp_refs[2 * m][...]
        bb = mlp_refs[2 * m + 1][...]
        y = jnp.dot(y, w, preferred_element_type=jnp.float32) + bb
        if m < n_mlp - 1:
            y = _apply_act(y, act)
    o_ref[...] = y.astype(o_ref.dtype)


def fused_branches_pallas(x_flat, weight_arrays, *, T, Bp, HC, act,
                          n_lstm, n_mlp, out_cols):
    operands = [x_flat] + list(weight_arrays)
    kernel = functools.partial(fused_branches_kernel, T=T, Bp=Bp, HC=HC, act=act,
                               n_lstm=n_lstm, n_mlp=n_mlp)
    # No grid, no pipelined BlockSpecs: every operand is a whole-array VMEM
    # block (total resident size ~100 KiB, far below any VMEM limit).
    return pl.pallas_call(
        kernel,
        out_shape=jax.ShapeDtypeStruct((Bp, out_cols), jnp.float32),
        in_specs=[pl.BlockSpec(memory_space=pltpu.MemorySpace.VMEM)] * len(operands),
        out_specs=pl.BlockSpec(memory_space=pltpu.MemorySpace.VMEM),
    )(*operands)


# ----------------------------------------------------------------------------
# Parameter init (PyTorch layout)
# ----------------------------------------------------------------------------
def init_lstm_params(key, input_size, hidden, num_layers):
    params = []
    bound = 1.0 / np.sqrt(hidden)
    for layer in range(num_layers):
        d = input_size if layer == 0 else hidden
        key, k1, k2, k3, k4 = jax.random.split(key, 5)
        params.append(dict(
            w_ih=jax.random.uniform(k1, (4 * hidden, d), jnp.float32, -bound, bound),
            w_hh=jax.random.uniform(k2, (4 * hidden, hidden), jnp.float32, -bound, bound),
            b_ih=jax.random.uniform(k3, (4 * hidden,), jnp.float32, -bound, bound),
            b_hh=jax.random.uniform(k4, (4 * hidden,), jnp.float32, -bound, bound),
        ))
    return params, key


def init_mlp_params(key, input_size, hidden_layers, output_size):
    params = []
    dims = [input_size] + list(hidden_layers) + [output_size]
    for i in range(len(dims) - 1):
        fan_in, fan_out = dims[i], dims[i + 1]
        bound = 1.0 / np.sqrt(fan_in)
        key, k1, k2 = jax.random.split(key, 3)
        params.append((
            jax.random.uniform(k1, (fan_out, fan_in), jnp.float32, -bound, bound),
            jax.random.uniform(k2, (fan_out,), jnp.float32, -bound, bound),
        ))
    return params, key


# ----------------------------------------------------------------------------
# One-time re-layout: block-diagonal stacking of both branches.
# ----------------------------------------------------------------------------
def _round_up(n, m):
    return ((n + m - 1) // m) * m


def prepare_params(params):
    lstm_n, lstm_m = params["normalize_lstm"], params["market_lstm"]
    mlp_n, mlp_m = params["normalize_module"], params["market_module"]
    assert len(lstm_n) == len(lstm_m), "block-diag fusion needs equal LSTM depth"
    assert len(mlp_n) == len(mlp_m), "block-diag fusion needs equal MLP depth"
    # TODO(synk): differing hidden activations would need a per-column masked
    # activation in the kernel; identical ('relu') in this configuration.
    assert HIDDEN_ACT == MARKET_ACT

    H_n = lstm_n[0]["w_hh"].shape[1]
    H_m = lstm_m[0]["w_hh"].shape[1]
    HC = H_n + H_m                                   # combined hidden width (64)

    def scatter_gate_cols(dst, w_t, row_off, col_off, H):
        # w_t: (rows, 4H) in PyTorch gate order (i,f,g,o); place each gate block
        # at column gate*HC + col_off of dst (rows at row_off).
        rows = w_t.shape[0]
        for g4 in range(4):
            dst[row_off:row_off + rows,
                g4 * HC + col_off: g4 * HC + col_off + H] = w_t[:, g4 * H:(g4 + 1) * H]

    arrays = []
    din_pad = None
    for l in range(len(lstm_n)):
        pn, pm = lstm_n[l], lstm_m[l]
        d_n = pn["w_ih"].shape[1]
        d_m = pm["w_ih"].shape[1]
        rows = _round_up(d_n + d_m, 8) if l == 0 else HC
        if l == 0:
            din_pad = rows                           # 49 + 21 -> 72
        wih = np.zeros((rows, 4 * HC), np.float32)
        scatter_gate_cols(wih, np.asarray(pn["w_ih"].T), 0, 0, H_n)
        scatter_gate_cols(wih, np.asarray(pm["w_ih"].T), d_n, H_n, H_m)
        whh = np.zeros((HC, 4 * HC), np.float32)
        scatter_gate_cols(whh, np.asarray(pn["w_hh"].T), 0, 0, H_n)
        scatter_gate_cols(whh, np.asarray(pm["w_hh"].T), H_n, H_n, H_m)
        bias = np.zeros((1, 4 * HC), np.float32)
        scatter_gate_cols(bias, np.asarray((pn["b_ih"] + pn["b_hh"]).reshape(1, -1)), 0, 0, H_n)
        scatter_gate_cols(bias, np.asarray((pm["b_ih"] + pm["b_hh"]).reshape(1, -1)), 0, H_n, H_m)
        arrays += [jnp.asarray(wih), jnp.asarray(whh), jnp.asarray(bias)]

    # Block-diagonal MLP heads; every layer's output is padded to 128 lanes so
    # all matmuls and the final store are lane-dense (padded rows of the next
    # layer are zero, so act(0) on padded columns contributes nothing).
    in_width = HC
    in_off_m = H_n
    n_mlp = len(mlp_n)
    for j in range(n_mlp):
        w_n, b_n = mlp_n[j]                          # (out, in) PyTorch layout
        w_m, b_m = mlp_m[j]
        out_n, out_m = w_n.shape[0], w_m.shape[0]
        out_width = _round_up(out_n + out_m, 128)
        W = np.zeros((in_width, out_width), np.float32)
        W[0:w_n.shape[1], 0:out_n] = np.asarray(w_n.T)
        W[in_off_m:in_off_m + w_m.shape[1], out_n:out_n + out_m] = np.asarray(w_m.T)
        bvec = np.zeros((1, out_width), np.float32)
        bvec[0, 0:out_n] = np.asarray(b_n)
        bvec[0, out_n:out_n + out_m] = np.asarray(b_m)
        arrays += [jnp.asarray(W), jnp.asarray(bvec)]
        in_width, in_off_m = out_width, out_n

    meta = dict(HC=HC, n_lstm=len(lstm_n), n_mlp=n_mlp, din_pad=din_pad,
                out_cols=in_width, out_n=mlp_n[-1][0].shape[0], act=HIDDEN_ACT)
    return arrays, meta


# ----------------------------------------------------------------------------
# Forward pass (single Pallas launch + minimal JAX glue)
# ----------------------------------------------------------------------------
def make_model_forward(meta):
    def model_forward(arrays, x, s, z):
        del s  # `s` is unused by LSTM_Model.forward (matches the PyTorch module)
        B, T, _ = x.shape
        Bp = ((B + 7) // 8) * 8                       # pad batch to full sublanes
        # One fused preprocessing step: feature-concat both branches, pad batch
        # and feature tail, go time-major, flatten.
        xz = jnp.concatenate([x, z], axis=-1)         # (B, T, 70)
        xz = jnp.pad(xz, ((0, Bp - B), (0, 0), (0, meta["din_pad"] - xz.shape[-1])))
        x_flat = jnp.transpose(xz, (1, 0, 2)).reshape(T * Bp, meta["din_pad"])

        out = fused_branches_pallas(
            x_flat, arrays, T=T, Bp=Bp, HC=meta["HC"], act=meta["act"],
            n_lstm=meta["n_lstm"], n_mlp=meta["n_mlp"], out_cols=meta["out_cols"])

        on = meta["out_n"]
        # TODO(synk): torch.sort has no Mosaic/Pallas lowering; sorted in plain JAX.
        normalized_output = jnp.sort(out[:B, :on], axis=1)
        estimated_sigma = out[:B, on:on + 1]
        raw_output = normalized_output * estimated_sigma
        return normalized_output, raw_output
    return model_forward


# ----------------------------------------------------------------------------
# Pure-JAX reference (correctness check, original PyTorch layout)
# ----------------------------------------------------------------------------
def _ref_lstm(x, p):
    B, T, _ = x.shape
    H = p["w_hh"].shape[1]

    def step(carry, x_t):
        h, c = carry
        gates = x_t @ p["w_ih"].T + p["b_ih"] + h @ p["w_hh"].T + p["b_hh"]
        i, f, g, o = jnp.split(gates, 4, axis=1)
        i, f, o = jax.nn.sigmoid(i), jax.nn.sigmoid(f), jax.nn.sigmoid(o)
        g = jnp.tanh(g)
        c = f * c + i * g
        h = o * jnp.tanh(c)
        return (h, c), h

    init = (jnp.zeros((B, H), jnp.float32), jnp.zeros((B, H), jnp.float32))
    _, hs = jax.lax.scan(step, init, jnp.transpose(x, (1, 0, 2)))
    return jnp.transpose(hs, (1, 0, 2))


def _ref_mlp(x, mlp_params, activation):
    n = len(mlp_params)
    for idx, (w, b) in enumerate(mlp_params):
        x = x @ w.T + b
        if idx < n - 1:
            x = _apply_act(x, activation)
    return x


def _ref_forward(params, x, s, z):
    del s
    nh = x
    for p in params["normalize_lstm"]:
        nh = _ref_lstm(nh, p)
    norm = _ref_mlp(nh[:, -1, :], params["normalize_module"], HIDDEN_ACT)
    norm = jnp.sort(norm, axis=1)
    mh = z
    for p in params["market_lstm"]:
        mh = _ref_lstm(mh, p)
    sigma = _ref_mlp(mh[:, -1, :], params["market_module"], MARKET_ACT)
    return norm, norm * sigma


# ----------------------------------------------------------------------------
# Main
# ----------------------------------------------------------------------------
if __name__ == "__main__":
    key = jax.random.PRNGKey(0)

    params = {}
    params["normalize_lstm"], key = init_lstm_params(key, INPUT_SIZE, LSTM_H, LSTM_LAYERS)
    params["normalize_module"], key = init_mlp_params(key, LSTM_H, HIDDEN_LAYERS, OUTPUT_SIZE)
    params["market_lstm"], key = init_lstm_params(key, MARKET_DATA_SIZE, MARKET_LSTM_H,
                                                  MARKET_LSTM_LAYERS)
    params["market_module"], key = init_mlp_params(key, MARKET_LSTM_H, MARKET_HIDDEN_LAYERS, 1)

    arrays, meta = prepare_params(params)       # one-time block-diagonal re-layout
    model_forward = make_model_forward(meta)

    B, T = 2, 8
    key, kx, ks, kz = jax.random.split(key, 4)
    x = jax.random.normal(kx, (B, T, INPUT_SIZE), jnp.float32)
    s = jax.random.normal(ks, (B, T, INPUT_SIZE), jnp.float32)
    z = jax.random.normal(kz, (B, T, MARKET_DATA_SIZE), jnp.float32)

    normalized_output, raw_output = jax.jit(model_forward)(arrays, x, s, z)
    jax.block_until_ready((normalized_output, raw_output))

    ref_norm, ref_raw = _ref_forward(params, x, s, z)
    np.testing.assert_allclose(np.asarray(normalized_output), np.asarray(ref_norm),
                               rtol=1e-3, atol=1e-3)
    np.testing.assert_allclose(np.asarray(raw_output), np.asarray(ref_raw),
                               rtol=1e-3, atol=1e-3)

    print("KERNEL_OK")
</pallas_src>

<mosaic_0001>
module attributes {stable_mosaic.version = 11 : i64} {
  func.func @fused_branches_kernel(%arg0: memref<64x72xf32, #tpu.memory_space<vmem>>, %arg1: memref<72x256xf32, #tpu.memory_space<vmem>>, %arg2: memref<64x256xf32, #tpu.memory_space<vmem>>, %arg3: memref<1x256xf32, #tpu.memory_space<vmem>>, %arg4: memref<64x128xf32, #tpu.memory_space<vmem>>, %arg5: memref<1x128xf32, #tpu.memory_space<vmem>>, %arg6: memref<128x128xf32, #tpu.memory_space<vmem>>, %arg7: memref<1x128xf32, #tpu.memory_space<vmem>>, %arg8: memref<8x128xf32, #tpu.memory_space<vmem>>) attributes {dimension_semantics = [], scalar_prefetch = 0 : i64, scratch_operands = 0 : i64, tpu.core_type = #tpu.core_type<tc>} {
    %c0 = arith.constant 0 : index
    %c0_0 = arith.constant 0 : index
    %0 = vector.load %arg0[%c0, %c0_0] : memref<64x72xf32, #tpu.memory_space<vmem>>, vector<64x72xf32>
    %c0_1 = arith.constant 0 : index
    %c0_2 = arith.constant 0 : index
    %1 = vector.load %arg1[%c0_1, %c0_2] : memref<72x256xf32, #tpu.memory_space<vmem>>, vector<72x256xf32>
    %c0_3 = arith.constant 0 : index
    %c0_4 = arith.constant 0 : index
    %2 = vector.load %arg2[%c0_3, %c0_4] : memref<64x256xf32, #tpu.memory_space<vmem>>, vector<64x256xf32>
    %c0_5 = arith.constant 0 : index
    %c0_6 = arith.constant 0 : index
    %3 = vector.load %arg3[%c0_5, %c0_6] : memref<1x256xf32, #tpu.memory_space<vmem>>, vector<1x256xf32>
    %cst = arith.constant dense<0.000000e+00> : vector<64x256xf32>
    %4 = tpu.matmul %0, %1, %cst {dimension_numbers = #tpu.dot_dimension_numbers<[1], [0], [0], [1], [0, 0, 1, 1], [], []>} : vector<64x72xf32>, vector<72x256xf32>, vector<64x256xf32> -> vector<64x256xf32>
    %5 = vector.broadcast %3 : vector<1x256xf32> to vector<64x256xf32>
    %6 = arith.addf %4, %5 : vector<64x256xf32>
    %cst_7 = arith.constant 0.000000e+00 : f32
    %7 = vector.broadcast %cst_7 : f32 to vector<8x64xf32>
    %cst_8 = arith.constant 0.000000e+00 : f32
    %8 = vector.broadcast %cst_8 : f32 to vector<8x64xf32>
    %9 = vector.extract_strided_slice %6 {offsets = [0, 0], sizes = [8, 256], strides = [1, 1]} : vector<64x256xf32> to vector<8x256xf32>
    %cst_9 = arith.constant dense<0.000000e+00> : vector<8x256xf32>
    %10 = tpu.matmul %7, %2, %cst_9 {dimension_numbers = #tpu.dot_dimension_numbers<[1], [0], [0], [1], [0, 0, 1, 1], [], []>} : vector<8x64xf32>, vector<64x256xf32>, vector<8x256xf32> -> vector<8x256xf32>
    %11 = arith.addf %9, %10 : vector<8x256xf32>
    %12 = arith.negf %11 : vector<8x256xf32>
    %13 = math.exp %12 : vector<8x256xf32>
    %cst_10 = arith.constant 1.000000e+00 : f32
    %14 = vector.broadcast %cst_10 : f32 to vector<8x256xf32>
    %15 = arith.addf %14, %13 : vector<8x256xf32>
    %16 = arith.divf %14, %15 : vector<8x256xf32>
    %17 = math.tanh %11 : vector<8x256xf32>
    %18 = vector.extract_strided_slice %16 {offsets = [0, 64], sizes = [8, 64], strides = [1, 1]} : vector<8x256xf32> to vector<8x64xf32>
    %19 = arith.mulf %18, %8 : vector<8x64xf32>
    %20 = vector.extract_strided_slice %16 {offsets = [0, 0], sizes = [8, 64], strides = [1, 1]} : vector<8x256xf32> to vector<8x64xf32>
    %21 = vector.extract_strided_slice %17 {offsets = [0, 128], sizes = [8, 64], strides = [1, 1]} : vector<8x256xf32> to vector<8x64xf32>
    %22 = arith.mulf %20, %21 : vector<8x64xf32>
    %23 = arith.addf %19, %22 : vector<8x64xf32>
    %24 = vector.extract_strided_slice %16 {offsets = [0, 192], sizes = [8, 64], strides = [1, 1]} : vector<8x256xf32> to vector<8x64xf32>
    %25 = math.tanh %23 : vector<8x64xf32>
    %26 = arith.mulf %24, %25 : vector<8x64xf32>
    %27 = vector.extract_strided_slice %6 {offsets = [8, 0], sizes = [8, 256], strides = [1, 1]} : vector<64x256xf32> to vector<8x256xf32>
    %cst_11 = arith.constant dense<0.000000e+00> : vector<8x256xf32>
    %28 = tpu.matmul %26, %2, %cst_11 {dimension_numbers = #tpu.dot_dimension_numbers<[1], [0], [0], [1], [0, 0, 1, 1], [], []>} : vector<8x64xf32>, vector<64x256xf32>, vector<8x256xf32> -> vector<8x256xf32>
    %29 = arith.addf %27, %28 : vector<8x256xf32>
    %30 = arith.negf %29 : vector<8x256xf32>
    %31 = math.exp %30 : vector<8x256xf32>
    %cst_12 = arith.constant 1.000000e+00 : f32
    %32 = vector.broadcast %cst_12 : f32 to vector<8x256xf32>
    %33 = arith.addf %32, %31 : vector<8x256xf32>
    %34 = arith.divf %32, %33 : vector<8x256xf32>
    %35 = math.tanh %29 : vector<8x256xf32>
    %36 = vector.extract_strided_slice %34 {offsets = [0, 64], sizes = [8, 64], strides = [1, 1]} : vector<8x256xf32> to vector<8x64xf32>
    %37 = arith.mulf %36, %23 : vector<8x64xf32>
    %38 = vector.extract_strided_slice %34 {offsets = [0, 0], sizes = [8, 64], strides = [1, 1]} : vector<8x256xf32> to vector<8x64xf32>
    %39 = vector.extract_strided_slice %35 {offsets = [0, 128], sizes = [8, 64], strides = [1, 1]} : vector<8x256xf32> to vector<8x64xf32>
    %40 = arith.mulf %38, %39 : vector<8x64xf32>
    %41 = arith.addf %37, %40 : vector<8x64xf32>
    %42 = vector.extract_strided_slice %34 {offsets = [0, 192], sizes = [8, 64], strides = [1, 1]} : vector<8x256xf32> to vector<8x64xf32>
    %43 = math.tanh %41 : vector<8x64xf32>
    %44 = arith.mulf %42, %43 : vector<8x64xf32>
    %45 = vector.extract_strided_slice %6 {offsets = [16, 0], sizes = [8, 256], strides = [1, 1]} : vector<64x256xf32> to vector<8x256xf32>
    %cst_13 = arith.constant dense<0.000000e+00> : vector<8x256xf32>
    %46 = tpu.matmul %44, %2, %cst_13 {dimension_numbers = #tpu.dot_dimension_numbers<[1], [0], [0], [1], [0, 0, 1, 1], [], []>} : vector<8x64xf32>, vector<64x256xf32>, vector<8x256xf32> -> vector<8x256xf32>
    %47 = arith.addf %45, %46 : vector<8x256xf32>
    %48 = arith.negf %47 : vector<8x256xf32>
    %49 = math.exp %48 : vector<8x256xf32>
    %cst_14 = arith.constant 1.000000e+00 : f32
    %50 = vector.broadcast %cst_14 : f32 to vector<8x256xf32>
    %51 = arith.addf %50, %49 : vector<8x256xf32>
    %52 = arith.divf %50, %51 : vector<8x256xf32>
    %53 = math.tanh %47 : vector<8x256xf32>
    %54 = vector.extract_strided_slice %52 {offsets = [0, 64], sizes = [8, 64], strides = [1, 1]} : vector<8x256xf32> to vector<8x64xf32>
    %55 = arith.mulf %54, %41 : vector<8x64xf32>
    %56 = vector.extract_strided_slice %52 {offsets = [0, 0], sizes = [8, 64], strides = [1, 1]} : vector<8x256xf32> to vector<8x64xf32>
    %57 = vector.extract_strided_slice %53 {offsets = [0, 128], sizes = [8, 64], strides = [1, 1]} : vector<8x256xf32> to vector<8x64xf32>
    %58 = arith.mulf %56, %57 : vector<8x64xf32>
    %59 = arith.addf %55, %58 : vector<8x64xf32>
    %60 = vector.extract_strided_slice %52 {offsets = [0, 192], sizes = [8, 64], strides = [1, 1]} : vector<8x256xf32> to vector<8x64xf32>
    %61 = math.tanh %59 : vector<8x64xf32>
    %62 = arith.mulf %60, %61 : vector<8x64xf32>
    %63 = vector.extract_strided_slice %6 {offsets = [24, 0], sizes = [8, 256], strides = [1, 1]} : vector<64x256xf32> to vector<8x256xf32>
    %cst_15 = arith.constant dense<0.000000e+00> : vector<8x256xf32>
    %64 = tpu.matmul %62, %2, %cst_15 {dimension_numbers = #tpu.dot_dimension_numbers<[1], [0], [0], [1], [0, 0, 1, 1], [], []>} : vector<8x64xf32>, vector<64x256xf32>, vector<8x256xf32> -> vector<8x256xf32>
    %65 = arith.addf %63, %64 : vector<8x256xf32>
    %66 = arith.negf %65 : vector<8x256xf32>
    %67 = math.exp %66 : vector<8x256xf32>
    %cst_16 = arith.constant 1.000000e+00 : f32
    %68 = vector.broadcast %cst_16 : f32 to vector<8x256xf32>
    %69 = arith.addf %68, %67 : vector<8x256xf32>
    %70 = arith.divf %68, %69 : vector<8x256xf32>
    %71 = math.tanh %65 : vector<8x256xf32>
    %72 = vector.extract_strided_slice %70 {offsets = [0, 64], sizes = [8, 64], strides = [1, 1]} : vector<8x256xf32> to vector<8x64xf32>
    %73 = arith.mulf %72, %59 : vector<8x64xf32>
    %74 = vector.extract_strided_slice %70 {offsets = [0, 0], sizes = [8, 64], strides = [1, 1]} : vector<8x256xf32> to vector<8x64xf32>
    %75 = vector.extract_strided_slice %71 {offsets = [0, 128], sizes = [8, 64], strides = [1, 1]} : vector<8x256xf32> to vector<8x64xf32>
    %76 = arith.mulf %74, %75 : vector<8x64xf32>
    %77 = arith.addf %73, %76 : vector<8x64xf32>
    %78 = vector.extract_strided_slice %70 {offsets = [0, 192], sizes = [8, 64], strides = [1, 1]} : vector<8x256xf32> to vector<8x64xf32>
    %79 = math.tanh %77 : vector<8x64xf32>
    %80 = arith.mulf %78, %79 : vector<8x64xf32>
    %81 = vector.extract_strided_slice %6 {offsets = [32, 0], sizes = [8, 256], strides = [1, 1]} : vector<64x256xf32> to vector<8x256xf32>
    %cst_17 = arith.constant dense<0.000000e+00> : vector<8x256xf32>
    %82 = tpu.matmul %80, %2, %cst_17 {dimension_numbers = #tpu.dot_dimension_numbers<[1], [0], [0], [1], [0, 0, 1, 1], [], []>} : vector<8x64xf32>, vector<64x256xf32>, vector<8x256xf32> -> vector<8x256xf32>
    %83 = arith.addf %81, %82 : vector<8x256xf32>
    %84 = arith.negf %83 : vector<8x256xf32>
    %85 = math.exp %84 : vector<8x256xf32>
    %cst_18 = arith.constant 1.000000e+00 : f32
    %86 = vector.broadcast %cst_18 : f32 to vector<8x256xf32>
    %87 = arith.addf %86, %85 : vector<8x256xf32>
    %88 = arith.divf %86, %87 : vector<8x256xf32>
    %89 = math.tanh %83 : vector<8x256xf32>
    %90 = vector.extract_strided_slice %88 {offsets = [0, 64], sizes = [8, 64], strides = [1, 1]} : vector<8x256xf32> to vector<8x64xf32>
    %91 = arith.mulf %90, %77 : vector<8x64xf32>
    %92 = vector.extract_strided_slice %88 {offsets = [0, 0], sizes = [8, 64], strides = [1, 1]} : vector<8x256xf32> to vector<8x64xf32>
    %93 = vector.extract_strided_slice %89 {offsets = [0, 128], sizes = [8, 64], strides = [1, 1]} : vector<8x256xf32> to vector<8x64xf32>
    %94 = arith.mulf %92, %93 : vector<8x64xf32>
    %95 = arith.addf %91, %94 : vector<8x64xf32>
    %96 = vector.extract_strided_slice %88 {offsets = [0, 192], sizes = [8, 64], strides = [1, 1]} : vector<8x256xf32> to vector<8x64xf32>
    %97 = math.tanh %95 : vector<8x64xf32>
    %98 = arith.mulf %96, %97 : vector<8x64xf32>
    %99 = vector.extract_strided_slice %6 {offsets = [40, 0], sizes = [8, 256], strides = [1, 1]} : vector<64x256xf32> to vector<8x256xf32>
    %cst_19 = arith.constant dense<0.000000e+00> : vector<8x256xf32>
    %100 = tpu.matmul %98, %2, %cst_19 {dimension_numbers = #tpu.dot_dimension_numbers<[1], [0], [0], [1], [0, 0, 1, 1], [], []>} : vector<8x64xf32>, vector<64x256xf32>, vector<8x256xf32> -> vector<8x256xf32>
    %101 = arith.addf %99, %100 : vector<8x256xf32>
    %102 = arith.negf %101 : vector<8x256xf32>
    %103 = math.exp %102 : vector<8x256xf32>
    %cst_20 = arith.constant 1.000000e+00 : f32
    %104 = vector.broadcast %cst_20 : f32 to vector<8x256xf32>
    %105 = arith.addf %104, %103 : vector<8x256xf32>
    %106 = arith.divf %104, %105 : vector<8x256xf32>
    %107 = math.tanh %101 : vector<8x256xf32>
    %108 = vector.extract_strided_slice %106 {offsets = [0, 64], sizes = [8, 64], strides = [1, 1]} : vector<8x256xf32> to vector<8x64xf32>
    %109 = arith.mulf %108, %95 : vector<8x64xf32>
    %110 = vector.extract_strided_slice %106 {offsets = [0, 0], sizes = [8, 64], strides = [1, 1]} : vector<8x256xf32> to vector<8x64xf32>
    %111 = vector.extract_strided_slice %107 {offsets = [0, 128], sizes = [8, 64], strides = [1, 1]} : vector<8x256xf32> to vector<8x64xf32>
    %112 = arith.mulf %110, %111 : vector<8x64xf32>
    %113 = arith.addf %109, %112 : vector<8x64xf32>
    %114 = vector.extract_strided_slice %106 {offsets = [0, 192], sizes = [8, 64], strides = [1, 1]} : vector<8x256xf32> to vector<8x64xf32>
    %115 = math.tanh %113 : vector<8x64xf32>
    %116 = arith.mulf %114, %115 : vector<8x64xf32>
    %117 = vector.extract_strided_slice %6 {offsets = [48, 0], sizes = [8, 256], strides = [1, 1]} : vector<64x256xf32> to vector<8x256xf32>
    %cst_21 = arith.constant dense<0.000000e+00> : vector<8x256xf32>
    %118 = tpu.matmul %116, %2, %cst_21 {dimension_numbers = #tpu.dot_dimension_numbers<[1], [0], [0], [1], [0, 0, 1, 1], [], []>} : vector<8x64xf32>, vector<64x256xf32>, vector<8x256xf32> -> vector<8x256xf32>
    %119 = arith.addf %117, %118 : vector<8x256xf32>
    %120 = arith.negf %119 : vector<8x256xf32>
    %121 = math.exp %120 : vector<8x256xf32>
    %cst_22 = arith.constant 1.000000e+00 : f32
    %122 = vector.broadcast %cst_22 : f32 to vector<8x256xf32>
    %123 = arith.addf %122, %121 : vector<8x256xf32>
    %124 = arith.divf %122, %123 : vector<8x256xf32>
    %125 = math.tanh %119 : vector<8x256xf32>
    %126 = vector.extract_strided_slice %124 {offsets = [0, 64], sizes = [8, 64], strides = [1, 1]} : vector<8x256xf32> to vector<8x64xf32>
    %127 = arith.mulf %126, %113 : vector<8x64xf32>
    %128 = vector.extract_strided_slice %124 {offsets = [0, 0], sizes = [8, 64], strides = [1, 1]} : vector<8x256xf32> to vector<8x64xf32>
    %129 = vector.extract_strided_slice %125 {offsets = [0, 128], sizes = [8, 64], strides = [1, 1]} : vector<8x256xf32> to vector<8x64xf32>
    %130 = arith.mulf %128, %129 : vector<8x64xf32>
    %131 = arith.addf %127, %130 : vector<8x64xf32>
    %132 = vector.extract_strided_slice %124 {offsets = [0, 192], sizes = [8, 64], strides = [1, 1]} : vector<8x256xf32> to vector<8x64xf32>
    %133 = math.tanh %131 : vector<8x64xf32>
    %134 = arith.mulf %132, %133 : vector<8x64xf32>
    %135 = vector.extract_strided_slice %6 {offsets = [56, 0], sizes = [8, 256], strides = [1, 1]} : vector<64x256xf32> to vector<8x256xf32>
    %cst_23 = arith.constant dense<0.000000e+00> : vector<8x256xf32>
    %136 = tpu.matmul %134, %2, %cst_23 {dimension_numbers = #tpu.dot_dimension_numbers<[1], [0], [0], [1], [0, 0, 1, 1], [], []>} : vector<8x64xf32>, vector<64x256xf32>, vector<8x256xf32> -> vector<8x256xf32>
    %137 = arith.addf %135, %136 : vector<8x256xf32>
    %138 = arith.negf %137 : vector<8x256xf32>
    %139 = math.exp %138 : vector<8x256xf32>
    %cst_24 = arith.constant 1.000000e+00 : f32
    %140 = vector.broadcast %cst_24 : f32 to vector<8x256xf32>
    %141 = arith.addf %140, %139 : vector<8x256xf32>
    %142 = arith.divf %140, %141 : vector<8x256xf32>
    %143 = math.tanh %137 : vector<8x256xf32>
    %144 = vector.extract_strided_slice %142 {offsets = [0, 64], sizes = [8, 64], strides = [1, 1]} : vector<8x256xf32> to vector<8x64xf32>
    %145 = arith.mulf %144, %131 : vector<8x64xf32>
    %146 = vector.extract_strided_slice %142 {offsets = [0, 0], sizes = [8, 64], strides = [1, 1]} : vector<8x256xf32> to vector<8x64xf32>
    %147 = vector.extract_strided_slice %143 {offsets = [0, 128], sizes = [8, 64], strides = [1, 1]} : vector<8x256xf32> to vector<8x64xf32>
    %148 = arith.mulf %146, %147 : vector<8x64xf32>
    %149 = arith.addf %145, %148 : vector<8x64xf32>
    %150 = vector.extract_strided_slice %142 {offsets = [0, 192], sizes = [8, 64], strides = [1, 1]} : vector<8x256xf32> to vector<8x64xf32>
    %151 = math.tanh %149 : vector<8x64xf32>
    %152 = arith.mulf %150, %151 : vector<8x64xf32>
    %c0_25 = arith.constant 0 : index
    %c0_26 = arith.constant 0 : index
    %153 = vector.load %arg4[%c0_25, %c0_26] : memref<64x128xf32, #tpu.memory_space<vmem>>, vector<64x128xf32>
    %c0_27 = arith.constant 0 : index
    %c0_28 = arith.constant 0 : index
    %154 = vector.load %arg5[%c0_27, %c0_28] : memref<1x128xf32, #tpu.memory_space<vmem>>, vector<1x128xf32>
    %cst_29 = arith.constant dense<0.000000e+00> : vector<8x128xf32>
    %155 = tpu.matmul %152, %153, %cst_29 {dimension_numbers = #tpu.dot_dimension_numbers<[1], [0], [0], [1], [0, 0, 1, 1], [], []>} : vector<8x64xf32>, vector<64x128xf32>, vector<8x128xf32> -> vector<8x128xf32>
    %156 = vector.broadcast %154 : vector<1x128xf32> to vector<8x128xf32>
    %157 = arith.addf %155, %156 : vector<8x128xf32>
    %cst_30 = arith.constant 0.000000e+00 : f32
    %158 = vector.broadcast %cst_30 : f32 to vector<8x128xf32>
    %159 = arith.maximumf %157, %158 : vector<8x128xf32>
    %c0_31 = arith.constant 0 : index
    %c0_32 = arith.constant 0 : index
    %160 = vector.load %arg6[%c0_31, %c0_32] : memref<128x128xf32, #tpu.memory_space<vmem>>, vector<128x128xf32>
    %c0_33 = arith.constant 0 : index
    %c0_34 = arith.constant 0 : index
    %161 = vector.load %arg7[%c0_33, %c0_34] : memref<1x128xf32, #tpu.memory_space<vmem>>, vector<1x128xf32>
    %cst_35 = arith.constant dense<0.000000e+00> : vector<8x128xf32>
    %162 = tpu.matmul %159, %160, %cst_35 {dimension_numbers = #tpu.dot_dimension_numbers<[1], [0], [0], [1], [0, 0, 1, 1], [], []>} : vector<8x128xf32>, vector<128x128xf32>, vector<8x128xf32> -> vector<8x128xf32>
    %163 = vector.broadcast %161 : vector<1x128xf32> to vector<8x128xf32>
    %164 = arith.addf %162, %163 : vector<8x128xf32>
    %c0_36 = arith.constant 0 : index
    %c0_37 = arith.constant 0 : index
    %165 = vector.load %arg8[%c0_36, %c0_37] : memref<8x128xf32, #tpu.memory_space<vmem>>, vector<8x128xf32>
    tpu.vector_store %arg8[%c0_36, %c0_37], %164 {strides = array<i32>} : memref<8x128xf32, #tpu.memory_space<vmem>>, vector<8x128xf32>,
    return
  }
}

</mosaic_0001>

<bundles_post_ra>
// kernel: model_forward.1
= control target key start
LH: loop header
LB: loop body
LE: loop exit
PB: predicated region body
PF: predicated region fallthrough
CT: control target
= control target key end

     0   :  { %13 = vsyncpa [#allocation3], 0  ;;  %s1708_s0 = inlined_call_operand.vmem [shape: f32[64,72], index: 0, kind: input, shape index: {}]   ;;  %s1709_s1 = inlined_call_operand.vmem [shape: f32[72,256], index: 1, kind: input, shape index: {}]   ;;  %s1710_s2 = inlined_call_operand.hbm [shape: f32[64,256], index: 2, kind: input, shape index: {}]   ;;  %s1711_s3 = inlined_call_operand.vmem [shape: f32[1,256], index: 3, kind: input, shape index: {}]   ;;  %s1712_s4 = inlined_call_operand.vmem [shape: f32[64,128], index: 4, kind: input, shape index: {}]   ;;  %s1713_s5 = inlined_call_operand.vmem [shape: f32[1,128], index: 5, kind: input, shape index: {}]   ;;  %s1714_s6 = inlined_call_operand.hbm [shape: f32[128,128], index: 6, kind: input, shape index: {}]   ;;  %s1715_s7 = inlined_call_operand.vmem [shape: f32[1,128], index: 7, kind: input, shape index: {}]   ;;  %s1716_s8 = inlined_call_operand.vmem [shape: f32[8,128], index: 8, kind: output, shape index: {}]  }
   0x1   :  { %s23_s29 = sshll.u32 %s1710_s2, 4  ;;  %s24_s29 = int_to_ptr.hbm [resolvable:$true] %s23_s29 }
   0x2   :  { %14 = vsyncpa [#allocation5], 0  ;;  %s1265_s30 = smov [#allocation2]   ;;  %s42_s12 = sshll.u32 %s1714_s6, 4  ;;  %s43_s12 = int_to_ptr.hbm [resolvable:$true] %s42_s12 }
   0x3   :  { %s25_s9 = sshll.u32 %s1265_s30, 4  ;;  %s1266_s13 = smov 256   ;;  %s26_s9 = int_to_ptr.vmem [resolvable:$true] %s25_s9 }
   0x4   :  { %s1267_s14 = smov 16   ;;  %s1268_s15 = smov [#allocation4]  }
   0x5   :  { %31 = dma.hbm_to_vmem [thread:$0]  %s24_s29, 2048, %s26_s9, [#allocation3], %s1266_s13, %s1266_s13, %s1267_s14  }
   0x6   :  { %s44_s16 = sshll.u32 %s1268_s15, 4  ;;  %s1269_s17 = smov 128   ;;  %s45_s16 = int_to_ptr.vmem [resolvable:$true] %s44_s16 }
   0x7   :  { %s1270_s18 = smov 8  }
   0x8   :  { %50 = dma.hbm_to_vmem [thread:$0]  %s43_s12, 2048, %s45_s16, [#allocation5], %s1269_s17, %s1269_s17, %s1270_s18  }
   0x9   :  { %1261 = dma.done.wait [#allocation3], 2048  }
   0xa   :  { %1262 = vsyncadd [#allocation3], 4294965248 }
   0xb   :  { %1263 = dma.done.wait [#allocation5], 2048  }
   0xc   :  { %1264 = vsyncadd [#allocation5], 4294965248  ;;  %v85_v0 = vld [vmem:[%s1709_s1 + $0x80] sm:$0xff]  ;;  %v1327_v1 = vld [vmem:[#allocation2 + $0x70] sm:$0xff]  ;;  %vm109_vm0 = vcmask 588800   ;;  %v1271_v22 = vmov 0.0  }
   0xd   :  { %v83_v2 = vld [vmem:[%s1709_s1 + $0x70] sm:$0xff]  ;;  %141 = vmatpush.msra.mxu0 %v85_v0  ;;  %228 = vmatpush.msra.mxu2 %v1327_v1  ;;  %v1333_v3 = vld [vmem:[#allocation2 + $0x60] sm:$0xff]  ;;  %v1356_v11 = vld [vmem:[#allocation2 + $0x78] sm:$0xff]  ;;  %vm216_vm9 = vcmask 523264  }
   0xe   :  { %v81_v4 = vld [vmem:[%s1709_s1 + $0x60] sm:$0xff]  ;;  %v1338_v5 = vld [vmem:[#allocation2 + $0x50] sm:$0xff]  ;;  %343 = vmatpush.msra.mxu3 %v1356_v11  ;;  %v1362_v13 = vld [vmem:[#allocation2 + $0x68] sm:$0xff] }
   0xf   :  { %142 = vmatpush.msra.mxu0 %v83_v2  ;;  %229 = vmatpush.msra.mxu2 %v1333_v3  ;;  %v79_v6 = vld [vmem:[%s1709_s1 + $0x50] sm:$0xff]  ;;  %v1344_v7 = vld [vmem:[#allocation2 + $0x40] sm:$0xff]  ;;  %v1371_v16 = vld [vmem:[#allocation2 + $0x58] sm:$0xff] }
  0x10   :  { %v77_v8 = vld [vmem:[%s1709_s1 + $0x40] sm:$0xff]  ;;  %v1350_v9 = vld [vmem:[#allocation2 + $0x30] sm:$0xff]  ;;  %344 = vmatpush.msra.mxu3 %v1362_v13  ;;  %v1380_v19 = vld [vmem:[#allocation2 + $0x48] sm:$0xff] }
  0x11   :  { %143 = vmatpush.msra.mxu0 %v81_v4  ;;  %230 = vmatpush.msra.mxu2 %v1338_v5  ;;  %v75_v10 = vld [vmem:[%s1709_s1 + $0x30] sm:$0xff]  ;;  %v1358_v12 = vld [vmem:[#allocation2 + $0x20] sm:$0xff]  ;;  %v1397_v23 = vld [vmem:[#allocation2 + $0x38] sm:$0xff] }
  0x12   :  { %v73_v14 = vld [vmem:[%s1709_s1 + $0x20] sm:$0xff]  ;;  %v1367_v15 = vld [vmem:[#allocation2 + $0x10] sm:$0xff]  ;;  %345 = vmatpush.msra.mxu3 %v1371_v16  ;;  %v1406_v24 = vld [vmem:[%s1708_s0 + $0x8] sm:$0xff] }
  0x13   :  { %144 = vmatpush.msra.mxu0 %v79_v6  ;;  %231 = vmatpush.msra.mxu2 %v1344_v7  ;;  %v71_v17 = vld [vmem:[%s1709_s1 + $0x10] sm:$0xff]  ;;  %v1376_v18 = vld [vmem:[#allocation2] sm:$0xff]  ;;  %v1414_v25 = vld [vmem:[#allocation2 + $0x28] sm:$0xff] }
  0x14   :  { %v69_v20 = vld [vmem:[%s1709_s1] sm:$0xff]  ;;  %346 = vmatpush.msra.mxu3 %v1380_v19  ;;  %v86_v26 = vld [vmem:[%s1709_s1 + $0x88] sm:$0xff]  ;;  %v84_v27 = vld [vmem:[%s1709_s1 + $0x78] sm:$0xff] }
  0x15   :  { %145 = vmatpush.msra.mxu0 %v77_v8  ;;  %232 = vmatpush.msra.mxu2 %v1350_v9  ;;  %v1390_v21 = vld [vmem:[%s1708_s0] sm:$0xff]  ;;  %v63_v28 = vld [vmem:[%s1708_s0 + $0x10] sm:$0xff]  ;;  %v1433_v29 = vld [vmem:[#allocation2 + $0x18] sm:$0xff] }
  0x16   :  { %347 = vmatpush.msra.mxu3 %v1397_v23  ;;  %182 = vmatpush.msra.mxu1 %v86_v26  ;;  %v82_v30 = vld [vmem:[%s1709_s1 + $0x68] sm:$0xff]  ;;  %v80_v31 = vld [vmem:[%s1709_s1 + $0x58] sm:$0xff]  ;;  %v65_v39 = vld [vmem:[%s1708_s0 + $0x20] sm:$0xff] }
  0x17   :  { %146 = vmatpush.msra.mxu0 %v75_v10  ;;  %233 = vmatpush.msra.mxu2 %v1358_v12  ;;  %v78_v32 = vld [vmem:[%s1709_s1 + $0x48] sm:$0xff]  ;;  %v76_v33 = vld [vmem:[%s1709_s1 + $0x38] sm:$0xff]  ;;  %v67_v41 = vld [vmem:[%s1708_s0 + $0x30] sm:$0xff] }
  0x18   :  { %348 = vmatpush.msra.mxu3 %v1414_v25  ;;  %183 = vmatpush.msra.mxu1 %v84_v27  ;;  %v64_v34 = vld [vmem:[%s1708_s0 + $0x18] sm:$0xff]  ;;  %v1456_v35 = vld [vmem:[#allocation2 + $0x8] sm:$0xff]  ;;  %v103_v44 = vld [vmem:[%s1711_s3] sm:$0x3]  ;;  %s1272_s3 = smov 64  }
  0x19   :  { %147 = vmatpush.msra.mxu0 %v73_v14  ;;  %234 = vmatpush.msra.mxu2 %v1367_v15  ;;  %v74_v36 = vld [vmem:[%s1709_s1 + $0x28] sm:$0xff]  ;;  %v72_v37 = vld [vmem:[%s1709_s1 + $0x18] sm:$0xff]  ;;  %v105_v45 = vperm.slane %v103_v44, 0  ;;  %v1557_v8 = vperm.slane %v103_v44, 1 }
  0x1a   :  { %184 = vmatpush.msra.mxu1 %v82_v30  ;;  %349 = vmatpush.msra.mxu3 %v1433_v29  ;;  %v70_v38 = vld [vmem:[%s1709_s1 + $0x8] sm:$0xff]  ;;  %v68_v42 = vld [vmem:[%s1708_s0 + $0x38] sm:$0xff] }
  0x1b   :  { %148 = vmatpush.msra.mxu0 %v71_v17  ;;  %235 = vmatpush.msra.mxu2 %v1376_v18  ;;  %v66_v40 = vld [vmem:[%s1708_s0 + $0x28] sm:$0xff] }
  0x1c   :  { %236 = vmatmul.f32.vlgmr.msra.gmra.mxu2 %v1271_v22  ;;  %185 = vmatpush.msra.mxu1 %v80_v31 }
  0x1d   :  { %149 = vmatpush.msra.mxu0 %v69_v20  ;;  %323 = vmatpush.msrb.mxu2 %v1327_v1 }
  0x1e   :  { %1060 = vmatmul.msk.f32.vlgmr.msra.gmra.mxu0 %vm109_vm0, %v1390_v21  ;;  %186 = vmatpush.msra.mxu1 %v78_v32 }
  0x1f   :  { %248 = vmatpush.msrb.mxu0 %v1356_v11  ;;  %324 = vmatpush.msrb.mxu2 %v1333_v3 }
  0x20   :  { %187 = vmatpush.msra.mxu1 %v76_v33  ;;  %350 = vmatpush.msra.mxu3 %v1456_v35 }
  0x21   :  { %249 = vmatpush.msrb.mxu0 %v1362_v13  ;;  %325 = vmatpush.msrb.mxu2 %v1338_v5 }
  0x22   :  { %188 = vmatpush.msra.mxu1 %v74_v36  ;;  %438 = vmatpush.msrb.mxu3 %v1356_v11 }
  0x23   :  { %250 = vmatpush.msrb.mxu0 %v1371_v16  ;;  %326 = vmatpush.msrb.mxu2 %v1344_v7 }
  0x24   :  { %189 = vmatpush.msra.mxu1 %v72_v37  ;;  %439 = vmatpush.msrb.mxu3 %v1362_v13 }
  0x25   :  { %251 = vmatpush.msrb.mxu0 %v1380_v19  ;;  %327 = vmatpush.msrb.mxu2 %v1350_v9 }
  0x26   :  { %1061 = vmatmul.msk.f32.gmra.mxu0 %vm109_vm0, %v1406_v24  ;;  %190 = vmatpush.msra.mxu1 %v70_v38 }
  0x27   :  { %252 = vmatpush.msrb.mxu0 %v1397_v23  ;;  %328 = vmatpush.msrb.mxu2 %v1358_v12 }
  0x28   :  { %1068 = vmatmul.msk.f32.vlgmr.msra.gmra.mxu1 %vm109_vm0, %v1390_v21  ;;  %440 = vmatpush.msrb.mxu3 %v1371_v16 }
  0x29   :  { %253 = vmatpush.msrb.mxu0 %v1414_v25  ;;  %329 = vmatpush.msrb.mxu2 %v1367_v15 }
  0x2a   :  { %723 = vmatpush.msrb.mxu1 %v1356_v11  ;;  %441 = vmatpush.msrb.mxu3 %v1380_v19 }
  0x2b   :  { %330 = vmatpush.msrb.mxu2 %v1376_v18  ;;  %254 = vmatpush.msrb.mxu0 %v1433_v29 }
  0x2c   :  { %724 = vmatpush.msrb.mxu1 %v1362_v13  ;;  %442 = vmatpush.msrb.mxu3 %v1397_v23 }
  0x2d   :  { %418 = vmatpush.msra.mxu2 %v1327_v1  ;;  %255 = vmatpush.msrb.mxu0 %v1456_v35 }
  0x2e   :  { %1062 = vmatmul.msk.f32.gmra.mxu0 %vm109_vm0, %v63_v28  ;;  %725 = vmatpush.msrb.mxu1 %v1371_v16 }
  0x2f   :  { %419 = vmatpush.msra.mxu2 %v1333_v3  ;;  %703 = vmatpush.msra.mxu0 %v1327_v1 }
  0x30   :  { %443 = vmatpush.msrb.mxu3 %v1414_v25  ;;  %726 = vmatpush.msrb.mxu1 %v1380_v19 }
  0x31   :  { %420 = vmatpush.msra.mxu2 %v1338_v5  ;;  %704 = vmatpush.msra.mxu0 %v1333_v3 }
  0x32   :  { %1069 = vmatmul.msk.f32.gmra.mxu1 %vm109_vm0, %v1406_v24  ;;  %444 = vmatpush.msrb.mxu3 %v1433_v29 }
  0x33   :  { %421 = vmatpush.msra.mxu2 %v1344_v7  ;;  %705 = vmatpush.msra.mxu0 %v1338_v5 }
  0x34   :  { %727 = vmatpush.msrb.mxu1 %v1397_v23  ;;  %445 = vmatpush.msrb.mxu3 %v1456_v35 }
  0x35   :  { %422 = vmatpush.msra.mxu2 %v1350_v9  ;;  %706 = vmatpush.msra.mxu0 %v1344_v7 }
  0x36   :  { %1063 = vmatmul.msk.f32.gmra.mxu0 %vm109_vm0, %v64_v34  ;;  %728 = vmatpush.msrb.mxu1 %v1414_v25 }
  0x37   :  { %423 = vmatpush.msra.mxu2 %v1358_v12  ;;  %707 = vmatpush.msra.mxu0 %v1350_v9 }
  0x38   :  { %729 = vmatpush.msrb.mxu1 %v1433_v29 }
  0x39   :  { %424 = vmatpush.msra.mxu2 %v1367_v15  ;;  %708 = vmatpush.msra.mxu0 %v1358_v12 }
  0x3a   :  { %1070 = vmatmul.msk.f32.gmra.mxu1 %vm109_vm0, %v63_v28 }
  0x3b   :  { %425 = vmatpush.msra.mxu2 %v1376_v18  ;;  %709 = vmatpush.msra.mxu0 %v1367_v15 }
  0x3c   :  { %730 = vmatpush.msrb.mxu1 %v1456_v35 }
  0x3d   :  { %710 = vmatpush.msra.mxu0 %v1376_v18 }
  0x3e   :  { %1064 = vmatmul.msk.f32.gmra.mxu0 %vm109_vm0, %v65_v39  ;;  %913 = vmatpush.msra.mxu1 %v1356_v11 }
  0x40   :  { %914 = vmatpush.msra.mxu1 %v1362_v13 }
  0x42   :  { %915 = vmatpush.msra.mxu1 %v1371_v16 }
  0x43   :  { %1071 = vmatmul.msk.f32.gmra.mxu1 %vm109_vm0, %v64_v34 }
  0x44   :  { %916 = vmatpush.msra.mxu1 %v1380_v19 }
  0x46   :  { %1065 = vmatmul.msk.f32.gmra.mxu0 %vm109_vm0, %v66_v40  ;;  %917 = vmatpush.msra.mxu1 %v1397_v23 }
  0x48   :  { %918 = vmatpush.msra.mxu1 %v1414_v25 }
  0x4a   :  { %919 = vmatpush.msra.mxu1 %v1433_v29 }
  0x4b   :  { %1072 = vmatmul.msk.f32.gmra.mxu1 %vm109_vm0, %v65_v39 }
  0x4c   :  { %920 = vmatpush.msra.mxu1 %v1456_v35 }
  0x4e   :  { %1066 = vmatmul.msk.f32.gmra.mxu0 %vm109_vm0, %v67_v41 }
  0x53   :  { %1073 = vmatmul.msk.f32.gmra.mxu1 %vm109_vm0, %v66_v40 }
  0x56   :  { %1067 = vmatmul.msk.f32.gmra.mxu0 %vm109_vm0, %v68_v42 }
  0x5b   :  { %1074 = vmatmul.msk.f32.gmra.mxu1 %vm109_vm0, %v67_v41 }
  0x5e   :  { %256 = vmatmul.f32.vlgmr.msrb.gmra.mxu0 %v1271_v22 }
  0x5f   :  { %893 = vmatpush.msrb.mxu0 %v1327_v1 }
  0x61   :  { %894 = vmatpush.msrb.mxu0 %v1333_v3 }
  0x63   :  { %895 = vmatpush.msrb.mxu0 %v1338_v5  ;;  %1075 = vmatmul.msk.f32.gmra.mxu1 %vm109_vm0, %v68_v42 }
  0x65   :  { %896 = vmatpush.msrb.mxu0 %v1344_v7 }
  0x67   :  { %897 = vmatpush.msrb.mxu0 %v1350_v9 }
  0x69   :  { %898 = vmatpush.msrb.mxu0 %v1358_v12 }
  0x6b   :  { %899 = vmatpush.msrb.mxu0 %v1367_v15 }
  0x6d   :  { %900 = vmatpush.msrb.mxu0 %v1376_v18 }
  0x9b   :  { %v151_v43 = vpop.f32.mrf.mxu0 }
  0x9c   :  { %v152_v51 = vadd.f32 %v151_v43, %v105_v45 }
  0x9f   :  { %v237_v50 = vpop.f32.mrf.mxu2 }
  0xa0   :  { %v260_v52 = vadd.f32 %v237_v50, %v152_v51 }
  0xa2   :  { %v1076_v55 = vmul.f32 -1.442695, %v260_v52 }
  0xa3   :  { %v154_v46 = vpop.f32.mrf.mxu0 }
  0xa4   :  { %v1543_v47 = vadd.f32 %v154_v46, %v105_v45  ;;  %1117 = vpow2.f32 %v1076_v55 }
  0xa5   :  { %v192_v10 = vpop.f32.mrf.mxu1 }
  0xa6   :  { %v193_v17 = vadd.f32 %v192_v10, %v1557_v8 }
  0xaa   :  { %v1118_v58 = vpop.eup %1117 }
  0xab   :  { %v157_v48 = vpop.f32.mrf.mxu0  ;;  %v268_v60 = vadd.f32 1.0, %v1118_v58 }
  0xac   :  { %v1545_v49 = vadd.f32 %v157_v48, %v105_v45 }
  0xad   :  { %1119 = vrcp.f32 %v268_v60  ;;  %v281_v26 = vand.u32 2147483648, %v268_v60  ;;  %vm275_vm2 = vweird.f32 %v268_v60  ;;  %v279_v27 = vand.u32 2147483647, %v268_v60 }
  0xaf   :  { %v282_v30 = vor.u32 1.1754944e-38, %v281_v26  ;;  %vm280_vm4 = vcmp.eq.f32.partialorder %v279_v27, 8.507059e+37 }
  0xb3   :  { %v160_v53 = vpop.f32.mrf.mxu0  ;;  %v1120_v0 = vpop.eup %1119 }
  0xb4   :  { %v1547_v54 = vadd.f32 %v160_v53, %v105_v45  ;;  %v271_v2 = vmul.f32 %v1120_v0, %v268_v60  ;;  %vm276_vm1 = vweird.f32 %v1120_v0 }
  0xb5   :  { %vm277_vm3 = vmor %vm275_vm2, %vm276_vm1 }
  0xb6   :  { %v272_v14 = vsub.f32 1.0, %v271_v2  ;;  %v195_v2 = vpop.f32.mrf.mxu1 }
  0xb8   :  { %v273_v20 = vmul.f32 %v1120_v0, %v272_v14 }
  0xba   :  { %v274_v24 = vadd.f32 %v1120_v0, %v273_v20 }
  0xbb   :  { %v163_v56 = vpop.f32.mrf.mxu0 }
  0xbc   :  { %v1549_v57 = vadd.f32 %v163_v56, %v105_v45  ;;  %v278_v28 = vsel %vm277_vm3, %v1120_v0, %v274_v24 }
  0xbd   :  { %v283_v32 = vsel %vm280_vm4, %v282_v30, %v278_v28 }
  0xbe   :  { %v301_v42 = vmul.f32 0.0, %v283_v32 }
  0xc3   :  { %v166_v59 = vpop.f32.mrf.mxu0 }
  0xc4   :  { %v1551_v61 = vadd.f32 %v166_v59, %v105_v45 }
  0xcb   :  { %v169_v62 = vpop.f32.mrf.mxu0 }
  0xcc   :  { %v1553_v63 = vadd.f32 %v169_v62, %v105_v45 }
  0xd3   :  { %v172_v4 = vpop.f32.mrf.mxu0 }
  0xd4   :  { %v1555_v6 = vadd.f32 %v172_v4, %v105_v45  ;;  %v196_v4 = vadd.f32 %v195_v2, %v1557_v8 }
  0xdb   :  { %v257_v21 = vpop.f32.mrf.mxu0 }
  0xdc   :  { %v261_v22 = vadd.f32 %v257_v21, %v193_v17 }
  0xde   :  { %1121 = vtanh.f32 %v261_v22  ;;  %v1077_v34 = vmul.f32 -1.442695, %v261_v22 }
  0xe0   :  { %1123 = vpow2.f32 %v1077_v34 }
  0xe4   :  { %v1122_v31 = vpop.eup %1121 }
  0xe5   :  { %v302_v33 = vmul.f32 %v1122_v31, %v283_v32 }
  0xe6   :  { %v1124_v36 = vpop.eup %1123 }
  0xe7   :  { %304 = vrot.lane.b32.xlu0 %v302_v33, %s1272_s3  ;;  %v269_v37 = vadd.f32 1.0, %v1124_v36 }
  0xe9   :  { %1125 = vrcp.f32 %v269_v37  ;;  %v296_v46 = vand.u32 2147483648, %v269_v37  ;;  %vm290_vm6 = vweird.f32 %v269_v37  ;;  %v294_v48 = vand.u32 2147483647, %v269_v37 }
  0xeb   :  { %v297_v51 = vor.u32 1.1754944e-38, %v296_v46  ;;  %vm295_vm8 = vcmp.eq.f32.partialorder %v294_v48, 8.507059e+37 }
  0xef   :  { %v1126_v38 = vpop.eup %1125 }
  0xf0   :  { %v286_v39 = vmul.f32 %v1126_v38, %v269_v37  ;;  %vm291_vm5 = vweird.f32 %v1126_v38 }
  0xf1   :  { %vm292_vm7 = vmor %vm290_vm6, %vm291_vm5 }
  0xf2   :  { %v287_v40 = vsub.f32 1.0, %v286_v39 }
  0xf4   :  { %v288_v41 = vmul.f32 %v1126_v38, %v287_v40 }
  0xf6   :  { %v289_v45 = vadd.f32 %v1126_v38, %v288_v41 }
  0xf8   :  { %v293_v50 = vsel %vm292_vm7, %v1126_v38, %v289_v45 }
  0xf9   :  { %v298_v53 = vsel %vm295_vm8, %v297_v51, %v293_v50 }
 0x159   :  { %v305_v43 = vpop.permute.xlu0 %304 }
 0x15a   :  { %v1561_v44 = vadd.f32 %v305_v43, %v301_v42 }
 0x15c   :  { %1127 = vtanh.f32 %v1561_v44 }
 0x162   :  { %v1128_v52 = vpop.eup %1127 }
 0x163   :  { %v309_v55 = vmul.f32 %v1128_v52, %v298_v53 }
 0x165   :  { %311 = vrot.lane.b32.xlu0 %v309_v55, %s1272_s3 }
 0x1d7   :  { %v312_v56 = vpop.permute.xlu0 %311 }
 0x1d8   :  { %1078 = vmatmul.msk.f32.vlgmr.msrb.gmra.mxu2 %vm216_vm9, %v312_v56  ;;  %1079 = vmatmul.msk.f32.vlgmr.msra.gmra.mxu3 %vm216_vm9, %v312_v56 }
 0x1d9   :  { %513 = vmatpush.msrb.mxu2 %v1327_v1  ;;  %533 = vmatpush.msra.mxu3 %v1356_v11 }
 0x1db   :  { %514 = vmatpush.msrb.mxu2 %v1333_v3  ;;  %534 = vmatpush.msra.mxu3 %v1362_v13 }
 0x1dd   :  { %515 = vmatpush.msrb.mxu2 %v1338_v5  ;;  %535 = vmatpush.msra.mxu3 %v1371_v16 }
 0x1df   :  { %516 = vmatpush.msrb.mxu2 %v1344_v7  ;;  %536 = vmatpush.msra.mxu3 %v1380_v19 }
 0x1e1   :  { %517 = vmatpush.msrb.mxu2 %v1350_v9  ;;  %537 = vmatpush.msra.mxu3 %v1397_v23 }
 0x1e3   :  { %518 = vmatpush.msrb.mxu2 %v1358_v12  ;;  %538 = vmatpush.msra.mxu3 %v1414_v25 }
 0x1e5   :  { %519 = vmatpush.msrb.mxu2 %v1367_v15  ;;  %539 = vmatpush.msra.mxu3 %v1433_v29 }
 0x1e7   :  { %520 = vmatpush.msrb.mxu2 %v1376_v18  ;;  %540 = vmatpush.msra.mxu3 %v1456_v35 }
 0x25b   :  { %v332_v58 = vpop.f32.mrf.mxu2  ;;  %v352_v10 = vpop.f32.mrf.mxu3 }
 0x25c   :  { %v355_v59 = vadd.f32 %v332_v58, %v1543_v47  ;;  %v356_v17 = vadd.f32 %v352_v10, %v196_v4 }
 0x25e   :  { %v1080_v60 = vmul.f32 -1.442695, %v355_v59  ;;  %v1081_v33 = vmul.f32 -1.442695, %v356_v17 }
 0x260   :  { %1129 = vpow2.f32 %v1080_v60 }
 0x266   :  { %v1130_v62 = vpop.eup %1129 }
 0x267   :  { %v363_v0 = vadd.f32 1.0, %v1130_v62 }
 0x269   :  { %1131 = vrcp.f32 %v363_v0  ;;  %v376_v22 = vand.u32 2147483648, %v363_v0  ;;  %v374_v26 = vand.u32 2147483647, %v363_v0  ;;  %vm370_vm11 = vweird.f32 %v363_v0 }
 0x26a   :  { %1133 = vtanh.f32 %v356_v17 }
 0x26b   :  { %v377_v47 = vor.u32 1.1754944e-38, %v376_v22  ;;  %vm375_vm13 = vcmp.eq.f32.partialorder %v374_v26, 8.507059e+37  ;;  %1135 = vpow2.f32 %v1081_v33 }
 0x26f   :  { %v1132_v14 = vpop.eup %1131 }
 0x270   :  { %v366_v20 = vmul.f32 %v1132_v14, %v363_v0  ;;  %vm371_vm10 = vweird.f32 %v1132_v14  ;;  %v1134_v30 = vpop.eup %1133  ;;  %v198_v0 = vpop.f32.mrf.mxu1 }
 0x271   :  { %vm372_vm12 = vmor %vm370_vm11, %vm371_vm10  ;;  %v1136_v34 = vpop.eup %1135  ;;  %v199_v2 = vadd.f32 %v198_v0, %v1557_v8 }
 0x272   :  { %v367_v21 = vsub.f32 1.0, %v366_v20  ;;  %v364_v36 = vadd.f32 1.0, %v1136_v34 }
 0x274   :  { %v368_v24 = vmul.f32 %v1132_v14, %v367_v21  ;;  %1137 = vrcp.f32 %v364_v36  ;;  %v391_v46 = vand.u32 2147483648, %v364_v36  ;;  %vm385_vm15 = vweird.f32 %v364_v36 }
 0x275   :  { %v389_v48 = vand.u32 2147483647, %v364_v36 }
 0x276   :  { %v369_v27 = vadd.f32 %v1132_v14, %v368_v24  ;;  %v392_v51 = vor.u32 1.1754944e-38, %v391_v46 }
 0x277   :  { %vm390_vm1 = vcmp.eq.f32.partialorder %v389_v48, 8.507059e+37 }
 0x278   :  { %v373_v28 = vsel %vm372_vm12, %v1132_v14, %v369_v27 }
 0x279   :  { %v378_v31 = vsel %vm375_vm13, %v377_v47, %v373_v28 }
 0x27a   :  { %v397_v32 = vmul.f32 %v1134_v30, %v378_v31  ;;  %v1138_v37 = vpop.eup %1137  ;;  %v396_v41 = vmul.f32 %v378_v31, %v1561_v44 }
 0x27b   :  { %v381_v38 = vmul.f32 %v1138_v37, %v364_v36  ;;  %vm386_vm14 = vweird.f32 %v1138_v37 }
 0x27c   :  { %399 = vrot.lane.b32.xlu1 %v397_v32, %s1272_s3  ;;  %vm387_vm0 = vmor %vm385_vm15, %vm386_vm14 }
 0x27d   :  { %v382_v39 = vsub.f32 1.0, %v381_v38 }
 0x27f   :  { %v383_v40 = vmul.f32 %v1138_v37, %v382_v39 }
 0x281   :  { %v384_v45 = vadd.f32 %v1138_v37, %v383_v40 }
 0x283   :  { %v388_v50 = vsel %vm387_vm0, %v1138_v37, %v384_v45 }
 0x284   :  { %v393_v53 = vsel %vm390_vm1, %v392_v51, %v388_v50 }
 0x2ee   :  { %v400_v42 = vpop.permute.xlu1 %399 }
 0x2ef   :  { %v1587_v43 = vadd.f32 %v400_v42, %v396_v41 }
 0x2f1   :  { %1139 = vtanh.f32 %v1587_v43 }
 0x2f7   :  { %v1140_v52 = vpop.eup %1139 }
 0x2f8   :  { %v404_v55 = vmul.f32 %v1140_v52, %v393_v53 }
 0x2fa   :  { %406 = vrot.lane.b32.xlu1 %v404_v55, %s1272_s3 }
 0x36c   :  { %v407_v44 = vpop.permute.xlu1 %406 }
 0x36d   :  { %1082 = vmatmul.msk.f32.vlgmr.msra.gmra.mxu2 %vm216_vm9, %v407_v44  ;;  %1083 = vmatmul.msk.f32.vlgmr.msrb.gmra.mxu3 %vm216_vm9, %v407_v44 }
 0x36e   :  { %608 = vmatpush.msra.mxu2 %v1327_v1  ;;  %628 = vmatpush.msrb.mxu3 %v1356_v11 }
 0x370   :  { %609 = vmatpush.msra.mxu2 %v1333_v3  ;;  %629 = vmatpush.msrb.mxu3 %v1362_v13 }
 0x372   :  { %610 = vmatpush.msra.mxu2 %v1338_v5  ;;  %630 = vmatpush.msrb.mxu3 %v1371_v16 }
 0x374   :  { %611 = vmatpush.msra.mxu2 %v1344_v7  ;;  %631 = vmatpush.msrb.mxu3 %v1380_v19 }
 0x376   :  { %612 = vmatpush.msra.mxu2 %v1350_v9  ;;  %632 = vmatpush.msrb.mxu3 %v1397_v23 }
 0x378   :  { %613 = vmatpush.msra.mxu2 %v1358_v12  ;;  %633 = vmatpush.msrb.mxu3 %v1414_v25 }
 0x37a   :  { %614 = vmatpush.msra.mxu2 %v1367_v15  ;;  %634 = vmatpush.msrb.mxu3 %v1433_v29 }
 0x37c   :  { %615 = vmatpush.msra.mxu2 %v1376_v18  ;;  %635 = vmatpush.msrb.mxu3 %v1456_v35 }
 0x3f0   :  { %v427_v56 = vpop.f32.mrf.mxu2  ;;  %v447_v4 = vpop.f32.mrf.mxu3 }
 0x3f1   :  { %v450_v58 = vadd.f32 %v427_v56, %v1545_v49  ;;  %v451_v14 = vadd.f32 %v447_v4, %v199_v2 }
 0x3f3   :  { %v1084_v59 = vmul.f32 -1.442695, %v450_v58  ;;  %v1085_v31 = vmul.f32 -1.442695, %v451_v14 }
 0x3f5   :  { %1141 = vpow2.f32 %v1084_v59 }
 0x3fb   :  { %v1142_v60 = vpop.eup %1141 }
 0x3fc   :  { %v458_v62 = vadd.f32 1.0, %v1142_v60 }
 0x3fe   :  { %1143 = vrcp.f32 %v458_v62  ;;  %v471_v21 = vand.u32 2147483648, %v458_v62  ;;  %v469_v24 = vand.u32 2147483647, %v458_v62  ;;  %vm465_vm3 = vweird.f32 %v458_v62 }
 0x3ff   :  { %1145 = vtanh.f32 %v451_v14 }
 0x400   :  { %v472_v49 = vor.u32 1.1754944e-38, %v471_v21  ;;  %vm470_vm5 = vcmp.eq.f32.partialorder %v469_v24, 8.507059e+37  ;;  %1147 = vpow2.f32 %v1085_v31 }
 0x404   :  { %v1144_v10 = vpop.eup %1143 }
 0x405   :  { %v461_v17 = vmul.f32 %v1144_v10, %v458_v62  ;;  %vm466_vm2 = vweird.f32 %v1144_v10  ;;  %v1146_v47 = vpop.eup %1145 }
 0x406   :  { %vm467_vm4 = vmor %vm465_vm3, %vm466_vm2  ;;  %v1148_v32 = vpop.eup %1147 }
 0x407   :  { %v462_v20 = vsub.f32 1.0, %v461_v17  ;;  %v459_v33 = vadd.f32 1.0, %v1148_v32 }
 0x409   :  { %v463_v22 = vmul.f32 %v1144_v10, %v462_v20  ;;  %1149 = vrcp.f32 %v459_v33  ;;  %v486_v45 = vand.u32 2147483648, %v459_v33  ;;  %vm480_vm7 = vweird.f32 %v459_v33 }
 0x40a   :  { %v484_v46 = vand.u32 2147483647, %v459_v33 }
 0x40b   :  { %v464_v26 = vadd.f32 %v1144_v10, %v463_v22  ;;  %v487_v50 = vor.u32 1.1754944e-38, %v486_v45 }
 0x40c   :  { %vm485_vm10 = vcmp.eq.f32.partialorder %v484_v46, 8.507059e+37 }
 0x40d   :  { %v468_v27 = vsel %vm467_vm4, %v1144_v10, %v464_v26 }
 0x40e   :  { %v473_v28 = vsel %vm470_vm5, %v472_v49, %v468_v27 }
 0x40f   :  { %v492_v30 = vmul.f32 %v1146_v47, %v473_v28  ;;  %v1150_v34 = vpop.eup %1149  ;;  %v491_v39 = vmul.f32 %v473_v28, %v1587_v43 }
 0x410   :  { %v476_v36 = vmul.f32 %v1150_v34, %v459_v33  ;;  %vm481_vm6 = vweird.f32 %v1150_v34 }
 0x411   :  { %494 = vrot.lane.b32.xlu2 %v492_v30, %s1272_s3  ;;  %vm482_vm8 = vmor %vm480_vm7, %vm481_vm6 }
 0x412   :  { %v477_v37 = vsub.f32 1.0, %v476_v36 }
 0x414   :  { %v478_v38 = vmul.f32 %v1150_v34, %v477_v37 }
 0x416   :  { %v479_v42 = vadd.f32 %v1150_v34, %v478_v38 }
 0x418   :  { %v483_v48 = vsel %vm482_vm8, %v1150_v34, %v479_v42 }
 0x419   :  { %v488_v52 = vsel %vm485_vm10, %v487_v50, %v483_v48 }
 0x46b   :  { %v495_v40 = vpop.permute.xlu2 %494 }
 0x46c   :  { %v1613_v41 = vadd.f32 %v495_v40, %v491_v39 }
 0x46e   :  { %1151 = vtanh.f32 %v1613_v41 }
 0x474   :  { %v1152_v51 = vpop.eup %1151 }
 0x475   :  { %v499_v53 = vmul.f32 %v1152_v51, %v488_v52 }
 0x477   :  { %501 = vrot.lane.b32.xlu2 %v499_v53, %s1272_s3 }
 0x4d1   :  { %v502_v43 = vpop.permute.xlu2 %501 }
 0x4d2   :  { %1086 = vmatmul.msk.f32.vlgmr.msrb.gmra.mxu2 %vm216_vm9, %v502_v43  ;;  %1087 = vmatmul.msk.f32.vlgmr.msra.gmra.mxu3 %vm216_vm9, %v502_v43 }
 0x4d3   :  { %798 = vmatpush.msrb.mxu2 %v1327_v1  ;;  %818 = vmatpush.msra.mxu3 %v1356_v11  ;;  %v201_v11 = vpop.f32.mrf.mxu1 }
 0x4d5   :  { %799 = vmatpush.msrb.mxu2 %v1333_v3  ;;  %819 = vmatpush.msra.mxu3 %v1362_v13 }
 0x4d7   :  { %800 = vmatpush.msrb.mxu2 %v1338_v5  ;;  %820 = vmatpush.msra.mxu3 %v1371_v16 }
 0x4d9   :  { %801 = vmatpush.msrb.mxu2 %v1344_v7  ;;  %821 = vmatpush.msra.mxu3 %v1380_v19 }
 0x4db   :  { %802 = vmatpush.msrb.mxu2 %v1350_v9  ;;  %822 = vmatpush.msra.mxu3 %v1397_v23  ;;  %v204_v37 = vpop.f32.mrf.mxu1 }
 0x4dc   :  { %v205_v38 = vadd.f32 %v204_v37, %v1557_v8 }
 0x4dd   :  { %803 = vmatpush.msrb.mxu2 %v1358_v12  ;;  %823 = vmatpush.msra.mxu3 %v1414_v25  ;;  %v202_v12 = vadd.f32 %v201_v11, %v1557_v8 }
 0x4df   :  { %804 = vmatpush.msrb.mxu2 %v1367_v15  ;;  %824 = vmatpush.msra.mxu3 %v1433_v29 }
 0x4e1   :  { %805 = vmatpush.msrb.mxu2 %v1376_v18  ;;  %825 = vmatpush.msra.mxu3 %v1456_v35 }
 0x555   :  { %v522_v1 = vpop.f32.mrf.mxu2  ;;  %v542_v13 = vpop.f32.mrf.mxu3 }
 0x556   :  { %v545_v3 = vadd.f32 %v522_v1, %v1547_v54  ;;  %v546_v15 = vadd.f32 %v542_v13, %v202_v12 }
 0x558   :  { %v1088_v5 = vmul.f32 -1.442695, %v545_v3  ;;  %v1089_v59 = vmul.f32 -1.442695, %v546_v15 }
 0x55a   :  { %1153 = vpow2.f32 %v1088_v5 }
 0x560   :  { %v1154_v7 = vpop.eup %1153 }
 0x561   :  { %v553_v9 = vadd.f32 1.0, %v1154_v7 }
 0x563   :  { %1155 = vrcp.f32 %v553_v9  ;;  %v566_v18 = vand.u32 2147483648, %v553_v9  ;;  %v564_v29 = vand.u32 2147483647, %v553_v9  ;;  %vm560_vm12 = vweird.f32 %v553_v9 }
 0x564   :  { %1157 = vtanh.f32 %v546_v15 }
 0x565   :  { %v567_v54 = vor.u32 1.1754944e-38, %v566_v18  ;;  %vm565_vm14 = vcmp.eq.f32.partialorder %v564_v29, 8.507059e+37  ;;  %1159 = vpow2.f32 %v1089_v59 }
 0x569   :  { %v1156_v16 = vpop.eup %1155 }
 0x56a   :  { %v556_v19 = vmul.f32 %v1156_v16, %v553_v9  ;;  %vm561_vm11 = vweird.f32 %v1156_v16  ;;  %v1158_v44 = vpop.eup %1157 }
 0x56b   :  { %vm562_vm13 = vmor %vm560_vm12, %vm561_vm11  ;;  %v1160_v60 = vpop.eup %1159 }
 0x56c   :  { %v557_v23 = vsub.f32 1.0, %v556_v19  ;;  %v554_v62 = vadd.f32 1.0, %v1160_v60 }
 0x56e   :  { %v558_v25 = vmul.f32 %v1156_v16, %v557_v23  ;;  %1161 = vrcp.f32 %v554_v62  ;;  %v581_v22 = vand.u32 2147483648, %v554_v62  ;;  %vm575_vm0 = vweird.f32 %v554_v62 }
 0x56f   :  { %v579_v24 = vand.u32 2147483647, %v554_v62 }
 0x570   :  { %v559_v35 = vadd.f32 %v1156_v16, %v558_v25  ;;  %v582_v49 = vor.u32 1.1754944e-38, %v581_v22 }
 0x571   :  { %vm580_vm2 = vcmp.eq.f32.partialorder %v579_v24, 8.507059e+37 }
 0x572   :  { %v563_v55 = vsel %vm562_vm13, %v1156_v16, %v559_v35 }
 0x573   :  { %v568_v56 = vsel %vm565_vm14, %v567_v54, %v563_v55 }
 0x574   :  { %v587_v58 = vmul.f32 %v1158_v44, %v568_v56  ;;  %v1162_v0 = vpop.eup %1161  ;;  %v586_v14 = vmul.f32 %v568_v56, %v1613_v41 }
 0x575   :  { %v571_v2 = vmul.f32 %v1162_v0, %v554_v62  ;;  %vm576_vm15 = vweird.f32 %v1162_v0 }
 0x576   :  { %589 = vrot.lane.b32.xlu0 %v587_v58, %s1272_s3  ;;  %vm577_vm1 = vmor %vm575_vm0, %vm576_vm15  ;;  %v207_v58 = vpop.f32.mrf.mxu1 }
 0x577   :  { %v572_v4 = vsub.f32 1.0, %v571_v2 }
 0x579   :  { %v573_v10 = vmul.f32 %v1162_v0, %v572_v4 }
 0x57b   :  { %v574_v21 = vadd.f32 %v1162_v0, %v573_v10 }
 0x57d   :  { %v578_v26 = vsel %vm577_vm1, %v1162_v0, %v574_v21 }
 0x57e   :  { %v583_v47 = vsel %vm580_vm2, %v582_v49, %v578_v26  ;;  %v1648_v59 = vpop.f32.mrf.mxu1 }
 0x586   :  { %v1651_v2 = vpop.f32.mrf.mxu1 }
 0x5e8   :  { %v590_v17 = vpop.permute.xlu0 %589 }
 0x5e9   :  { %v592_v20 = vadd.f32 %v590_v17, %v586_v14  ;;  %v208_v14 = vadd.f32 %v207_v58, %v1557_v8 }
 0x5eb   :  { %1163 = vtanh.f32 %v592_v20 }
 0x5f1   :  { %v1164_v27 = vpop.eup %1163 }
 0x5f2   :  { %v594_v28 = vmul.f32 %v1164_v27, %v583_v47 }
 0x5f4   :  { %596 = vrot.lane.b32.xlu1 %v594_v28, %s1272_s3 }
 0x666   :  { %v597_v30 = vpop.permute.xlu1 %596 }
 0x667   :  { %1090 = vmatmul.msk.f32.vlgmr.msra.gmra.mxu2 %vm216_vm9, %v597_v30  ;;  %1091 = vmatmul.msk.f32.vlgmr.msrb.gmra.mxu3 %vm216_vm9, %v597_v30 }
 0x6ea   :  { %v617_v31 = vpop.f32.mrf.mxu2  ;;  %v637_v39 = vpop.f32.mrf.mxu3 }
 0x6eb   :  { %v640_v32 = vadd.f32 %v617_v31, %v1549_v57  ;;  %v641_v41 = vadd.f32 %v637_v39, %v205_v38 }
 0x6ed   :  { %v1092_v33 = vmul.f32 -1.442695, %v640_v32  ;;  %v1093_v3 = vmul.f32 -1.442695, %v641_v41 }
 0x6ef   :  { %1165 = vpow2.f32 %v1092_v33 }
 0x6f5   :  { %v1166_v34 = vpop.eup %1165 }
 0x6f6   :  { %v648_v36 = vadd.f32 1.0, %v1166_v34 }
 0x6f8   :  { %1167 = vrcp.f32 %v648_v36  ;;  %v661_v46 = vand.u32 2147483648, %v648_v36  ;;  %v659_v50 = vand.u32 2147483647, %v648_v36  ;;  %vm655_vm4 = vweird.f32 %v648_v36 }
 0x6f9   :  { %1169 = vtanh.f32 %v641_v41 }
 0x6fa   :  { %v662_v57 = vor.u32 1.1754944e-38, %v661_v46  ;;  %vm660_vm6 = vcmp.eq.f32.partialorder %v659_v50, 8.507059e+37  ;;  %1171 = vpow2.f32 %v1093_v3 }
 0x6fe   :  { %v1168_v40 = vpop.eup %1167 }
 0x6ff   :  { %v651_v42 = vmul.f32 %v1168_v40, %v648_v36  ;;  %vm656_vm3 = vweird.f32 %v1168_v40  ;;  %v1170_v53 = vpop.eup %1169 }
 0x700   :  { %vm657_vm5 = vmor %vm655_vm4, %vm656_vm3  ;;  %v1172_v5 = vpop.eup %1171 }
 0x701   :  { %v652_v45 = vsub.f32 1.0, %v651_v42  ;;  %v649_v7 = vadd.f32 1.0, %v1172_v5 }
 0x703   :  { %v653_v48 = vmul.f32 %v1168_v40, %v652_v45  ;;  %1173 = vrcp.f32 %v649_v7  ;;  %v676_v18 = vand.u32 2147483648, %v649_v7  ;;  %vm670_vm8 = vweird.f32 %v649_v7 }
 0x704   :  { %v674_v25 = vand.u32 2147483647, %v649_v7 }
 0x705   :  { %v654_v51 = vadd.f32 %v1168_v40, %v653_v48  ;;  %v677_v35 = vor.u32 1.1754944e-38, %v676_v18 }
 0x706   :  { %vm675_vm11 = vcmp.eq.f32.partialorder %v674_v25, 8.507059e+37 }
 0x707   :  { %v658_v52 = vsel %vm657_vm5, %v1168_v40, %v654_v51 }
 0x708   :  { %v663_v43 = vsel %vm660_vm6, %v662_v57, %v658_v52 }
 0x709   :  { %v682_v1 = vmul.f32 %v1170_v53, %v663_v43  ;;  %v1174_v9 = vpop.eup %1173  ;;  %v681_v16 = vmul.f32 %v663_v43, %v592_v20 }
 0x70a   :  { %v666_v11 = vmul.f32 %v1174_v9, %v649_v7  ;;  %vm671_vm7 = vweird.f32 %v1174_v9 }
 0x70b   :  { %684 = vrot.lane.b32.xlu2 %v682_v1, %s1272_s3  ;;  %vm672_vm10 = vmor %vm670_vm8, %vm671_vm7 }
 0x70c   :  { %v667_v12 = vsub.f32 1.0, %v666_v11 }
 0x70e   :  { %v668_v13 = vmul.f32 %v1174_v9, %v667_v12 }
 0x710   :  { %v669_v23 = vadd.f32 %v1174_v9, %v668_v13  ;;  %v211_v13 = vadd.f32 %v1648_v59, %v1557_v8 }
 0x712   :  { %v673_v29 = vsel %vm672_vm10, %v1174_v9, %v669_v23 }
 0x713   :  { %v678_v55 = vsel %vm675_vm11, %v677_v35, %v673_v29 }
 0x765   :  { %v685_v15 = vpop.permute.xlu2 %684 }
 0x766   :  { %v687_v19 = vadd.f32 %v685_v15, %v681_v16 }
 0x768   :  { %1175 = vtanh.f32 %v687_v19 }
 0x76e   :  { %v1176_v54 = vpop.eup %1175 }
 0x76f   :  { %v689_v44 = vmul.f32 %v1176_v54, %v678_v55 }
 0x771   :  { %691 = vrot.lane.b32.xlu0 %v689_v44, %s1272_s3 }
 0x7e3   :  { %v692_v56 = vpop.permute.xlu0 %691 }
 0x7e4   :  { %1094 = vmatmul.msk.f32.vlgmr.msra.gmra.mxu0 %vm216_vm9, %v692_v56  ;;  %1095 = vmatmul.msk.f32.vlgmr.msrb.gmra.mxu1 %vm216_vm9, %v692_v56 }
 0x861   :  { %v712_v60 = vpop.f32.mrf.mxu0  ;;  %v732_v17 = vpop.f32.mrf.mxu1 }
 0x862   :  { %v735_v62 = vadd.f32 %v712_v60, %v1551_v61  ;;  %v736_v21 = vadd.f32 %v732_v17, %v208_v14 }
 0x864   :  { %v1096_v0 = vmul.f32 -1.442695, %v735_v62  ;;  %v1097_v33 = vmul.f32 -1.442695, %v736_v21 }
 0x866   :  { %1177 = vpow2.f32 %v1096_v0 }
 0x86c   :  { %v1178_v4 = vpop.eup %1177 }
 0x86d   :  { %v743_v10 = vadd.f32 1.0, %v1178_v4 }
 0x86f   :  { %1179 = vrcp.f32 %v743_v10  ;;  %v756_v26 = vand.u32 2147483648, %v743_v10  ;;  %v754_v27 = vand.u32 2147483647, %v743_v10  ;;  %vm750_vm13 = vweird.f32 %v743_v10 }
 0x870   :  { %1181 = vtanh.f32 %v736_v21 }
 0x871   :  { %v757_v47 = vor.u32 1.1754944e-38, %v756_v26  ;;  %vm755_vm15 = vcmp.eq.f32.partialorder %v754_v27, 8.507059e+37  ;;  %1183 = vpow2.f32 %v1097_v33 }
 0x875   :  { %v1180_v20 = vpop.eup %1179 }
 0x876   :  { %v746_v22 = vmul.f32 %v1180_v20, %v743_v10  ;;  %vm751_vm12 = vweird.f32 %v1180_v20  ;;  %v1182_v30 = vpop.eup %1181 }
 0x877   :  { %vm752_vm14 = vmor %vm750_vm13, %vm751_vm12  ;;  %v1184_v34 = vpop.eup %1183 }
 0x878   :  { %v747_v24 = vsub.f32 1.0, %v746_v22  ;;  %v744_v36 = vadd.f32 1.0, %v1184_v34 }
 0x87a   :  { %v748_v49 = vmul.f32 %v1180_v20, %v747_v24  ;;  %1185 = vrcp.f32 %v744_v36  ;;  %v771_v48 = vand.u32 2147483648, %v744_v36  ;;  %vm765_vm1 = vweird.f32 %v744_v36 }
 0x87b   :  { %v769_v50 = vand.u32 2147483647, %v744_v36 }
 0x87c   :  { %v749_v61 = vadd.f32 %v1180_v20, %v748_v49  ;;  %v772_v57 = vor.u32 1.1754944e-38, %v771_v48 }
 0x87d   :  { %vm770_vm3 = vcmp.eq.f32.partialorder %v769_v50, 8.507059e+37 }
 0x87e   :  { %v753_v28 = vsel %vm752_vm14, %v1180_v20, %v749_v61 }
 0x87f   :  { %v758_v31 = vsel %vm755_vm15, %v757_v47, %v753_v28 }
 0x880   :  { %v777_v32 = vmul.f32 %v1182_v30, %v758_v31  ;;  %v1186_v37 = vpop.eup %1185  ;;  %v776_v41 = vmul.f32 %v758_v31, %v687_v19 }
 0x881   :  { %v761_v38 = vmul.f32 %v1186_v37, %v744_v36  ;;  %vm766_vm0 = vweird.f32 %v1186_v37 }
 0x882   :  { %779 = vrot.lane.b32.xlu1 %v777_v32, %s1272_s3  ;;  %vm767_vm2 = vmor %vm765_vm1, %vm766_vm0 }
 0x883   :  { %v762_v39 = vsub.f32 1.0, %v761_v38 }
 0x885   :  { %v763_v40 = vmul.f32 %v1186_v37, %v762_v39 }
 0x887   :  { %v764_v46 = vadd.f32 %v1186_v37, %v763_v40 }
 0x889   :  { %v768_v51 = vsel %vm767_vm2, %v1186_v37, %v764_v46  ;;  %v214_v37 = vadd.f32 %v1651_v2, %v1557_v8 }
 0x88a   :  { %v773_v53 = vsel %vm770_vm3, %v772_v57, %v768_v51 }
 0x8f4   :  { %v780_v42 = vpop.permute.xlu1 %779 }
 0x8f5   :  { %v782_v45 = vadd.f32 %v780_v42, %v776_v41 }
 0x8f7   :  { %1187 = vtanh.f32 %v782_v45 }
 0x8fd   :  { %v1188_v52 = vpop.eup %1187 }
 0x8fe   :  { %v784_v43 = vmul.f32 %v1188_v52, %v773_v53 }
 0x900   :  { %786 = vrot.lane.b32.xlu2 %v784_v43, %s1272_s3  ;;  %v982_v43 = vld [vmem:[%s1712_s4 + $0x38] sm:$0xff] }
 0x901   :  { %1000 = vmatpush.msra.mxu2 %v982_v43 }
 0x95a   :  { %v787_v1 = vpop.permute.xlu2 %786 }
 0x95b   :  { %1098 = vmatmul.msk.f32.vlgmr.msrb.gmra.mxu2 %vm216_vm9, %v787_v1  ;;  %1099 = vmatmul.msk.f32.vlgmr.msra.gmra.mxu3 %vm216_vm9, %v787_v1  ;;  %v981_v1 = vld [vmem:[%s1712_s4 + $0x30] sm:$0xff] }
 0x95c   :  { %1001 = vmatpush.msra.mxu2 %v981_v1 }
 0x9de   :  { %v807_v3 = vpop.f32.mrf.mxu2  ;;  %v827_v12 = vpop.f32.mrf.mxu3 }
 0x9df   :  { %v830_v5 = vadd.f32 %v807_v3, %v1553_v63  ;;  %v831_v15 = vadd.f32 %v827_v12, %v211_v13  ;;  %v980_v3 = vld [vmem:[%s1712_s4 + $0x28] sm:$0xff] }
 0x9e0   :  { %1002 = vmatpush.msra.mxu2 %v980_v3  ;;  %v976_v13 = vld [vmem:[%s1712_s4 + $0x8] sm:$0xff] }
 0x9e1   :  { %v1100_v7 = vmul.f32 -1.442695, %v830_v5  ;;  %v1101_v58 = vmul.f32 -1.442695, %v831_v15  ;;  %v979_v5 = vld [vmem:[%s1712_s4 + $0x20] sm:$0xff] }
 0x9e2   :  { %1003 = vmatpush.msra.mxu2 %v979_v5 }
 0x9e3   :  { %1189 = vpow2.f32 %v1100_v7  ;;  %v978_v7 = vld [vmem:[%s1712_s4 + $0x18] sm:$0xff] }
 0x9e4   :  { %1004 = vmatpush.msra.mxu2 %v978_v7 }
 0x9e9   :  { %v1190_v9 = vpop.eup %1189 }
 0x9ea   :  { %v838_v11 = vadd.f32 1.0, %v1190_v9 }
 0x9ec   :  { %1191 = vrcp.f32 %v838_v11  ;;  %v851_v18 = vand.u32 2147483648, %v838_v11  ;;  %v849_v29 = vand.u32 2147483647, %v838_v11  ;;  %vm845_vm5 = vweird.f32 %v838_v11 }
 0x9ed   :  { %1193 = vtanh.f32 %v831_v15 }
 0x9ee   :  { %v852_v63 = vor.u32 1.1754944e-38, %v851_v18  ;;  %vm850_vm7 = vcmp.eq.f32.partialorder %v849_v29, 8.507059e+37  ;;  %1195 = vpow2.f32 %v1101_v58 }
 0x9f2   :  { %v1192_v16 = vpop.eup %1191 }
 0x9f3   :  { %v841_v19 = vmul.f32 %v1192_v16, %v838_v11  ;;  %vm846_vm4 = vweird.f32 %v1192_v16  ;;  %v1194_v55 = vpop.eup %1193  ;;  %v977_v11 = vld [vmem:[%s1712_s4 + $0x10] sm:$0xff] }
 0x9f4   :  { %vm847_vm6 = vmor %vm845_vm5, %vm846_vm4  ;;  %v1196_v59 = vpop.eup %1195  ;;  %1005 = vmatpush.msra.mxu2 %v977_v11 }
 0x9f5   :  { %v842_v23 = vsub.f32 1.0, %v841_v19  ;;  %v839_v60 = vadd.f32 1.0, %v1196_v59  ;;  %v1028_v59 = vld [vmem:[#allocation4 + $0x78] sm:$0xff] }
 0x9f6   :  { %1006 = vmatpush.msra.mxu2 %v976_v13  ;;  %1033 = vmatpush.msrb.mxu3 %v1028_v59 }
 0x9f7   :  { %v843_v25 = vmul.f32 %v1192_v16, %v842_v23  ;;  %1197 = vrcp.f32 %v839_v60  ;;  %v866_v22 = vand.u32 2147483648, %v839_v60  ;;  %vm860_vm10 = vweird.f32 %v839_v60 }
 0x9f8   :  { %v864_v24 = vand.u32 2147483647, %v839_v60 }
 0x9f9   :  { %v844_v35 = vadd.f32 %v1192_v16, %v843_v25  ;;  %v867_v49 = vor.u32 1.1754944e-38, %v866_v22  ;;  %v1018_v22 = vld [vmem:[#allocation4 + $0x28] sm:$0xff] }
 0x9fa   :  { %vm865_vm12 = vcmp.eq.f32.partialorder %v864_v24, 8.507059e+37  ;;  %v1017_v24 = vld [vmem:[#allocation4 + $0x20] sm:$0xff] }
 0x9fb   :  { %v848_v54 = vsel %vm847_vm6, %v1192_v16, %v844_v35  ;;  %v975_v16 = vld [vmem:[%s1712_s4] sm:$0xff] }
 0x9fc   :  { %v853_v44 = vsel %vm850_vm7, %v852_v63, %v848_v54  ;;  %1007 = vmatpush.msra.mxu2 %v975_v16 }
 0x9fd   :  { %v872_v56 = vmul.f32 %v1194_v55, %v853_v44  ;;  %v1198_v62 = vpop.eup %1197  ;;  %v871_v14 = vmul.f32 %v853_v44, %v782_v45 }
 0x9fe   :  { %v856_v0 = vmul.f32 %v1198_v62, %v839_v60  ;;  %vm861_vm8 = vweird.f32 %v1198_v62  ;;  %v1027_v60 = vld [vmem:[#allocation4 + $0x70] sm:$0xff] }
 0x9ff   :  { %874 = vrot.lane.b32.xlu0 %v872_v56, %s1272_s3  ;;  %vm862_vm11 = vmor %vm860_vm10, %vm861_vm8  ;;  %1034 = vmatpush.msrb.mxu3 %v1027_v60 }
 0xa00   :  { %v857_v4 = vsub.f32 1.0, %v856_v0  ;;  %v1025_v0 = vld [vmem:[#allocation4 + $0x60] sm:$0xff] }
 0xa02   :  { %v858_v10 = vmul.f32 %v1198_v62, %v857_v4  ;;  %v1024_v4 = vld [vmem:[#allocation4 + $0x58] sm:$0xff] }
 0xa04   :  { %v859_v21 = vadd.f32 %v1198_v62, %v858_v10  ;;  %v1023_v10 = vld [vmem:[#allocation4 + $0x50] sm:$0xff] }
 0xa06   :  { %v863_v26 = vsel %vm862_vm11, %v1198_v62, %v859_v21  ;;  %v1026_v62 = vld [vmem:[#allocation4 + $0x68] sm:$0xff]  ;;  %v1019_v21 = vld [vmem:[#allocation4 + $0x30] sm:$0xff] }
 0xa07   :  { %v868_v61 = vsel %vm865_vm12, %v867_v49, %v863_v26  ;;  %1035 = vmatpush.msrb.mxu3 %v1026_v62  ;;  %v1016_v26 = vld [vmem:[#allocation4 + $0x18] sm:$0xff] }
 0xa09   :  { %1036 = vmatpush.msrb.mxu3 %v1025_v0 }
 0xa0b   :  { %1037 = vmatpush.msrb.mxu3 %v1024_v4 }
 0xa0d   :  { %1038 = vmatpush.msrb.mxu3 %v1023_v10 }
 0xa71   :  { %v875_v17 = vpop.permute.xlu0 %874 }
 0xa72   :  { %v1662_v20 = vadd.f32 %v875_v17, %v871_v14  ;;  %v1022_v14 = vld [vmem:[#allocation4 + $0x48] sm:$0xff]  ;;  %v1021_v17 = vld [vmem:[#allocation4 + $0x40] sm:$0xff] }
 0xa73   :  { %1039 = vmatpush.msrb.mxu3 %v1022_v14 }
 0xa74   :  { %1199 = vtanh.f32 %v1662_v20 }
 0xa75   :  { %1040 = vmatpush.msrb.mxu3 %v1021_v17 }
 0xa7a   :  { %v1200_v27 = vpop.eup %1199 }
 0xa7b   :  { %v879_v47 = vmul.f32 %v1200_v27, %v868_v61  ;;  %v1015_v27 = vld [vmem:[#allocation4 + $0x10] sm:$0xff]  ;;  %v1014_v61 = vld [vmem:[#allocation4 + $0x8] sm:$0xff] }
 0xa7d   :  { %881 = vrot.lane.b32.xlu1 %v879_v47, %s1272_s3  ;;  %v1013_v47 = vld [vmem:[#allocation4] sm:$0xff] }
 0xaef   :  { %v882_v28 = vpop.permute.xlu1 %881 }
 0xaf0   :  { %1102 = vmatmul.msk.f32.vlgmr.msrb.gmra.mxu0 %vm216_vm9, %v882_v28  ;;  %1103 = vmatmul.msk.f32.vlgmr.msra.gmra.mxu1 %vm216_vm9, %v882_v28  ;;  %v1115_v28 = vld [vmem:[%s1713_s5] ss:$0 sm:$0xff] }
 0xb6d   :  { %v902_v30 = vpop.f32.mrf.mxu0  ;;  %v922_v36 = vpop.f32.mrf.mxu1 }
 0xb6e   :  { %v925_v31 = vadd.f32 %v902_v30, %v1555_v6  ;;  %v926_v39 = vadd.f32 %v922_v36, %v214_v37 }
 0xb70   :  { %v1104_v32 = vmul.f32 -1.442695, %v925_v31  ;;  %v1105_v8 = vmul.f32 -1.442695, %v926_v39 }
 0xb72   :  { %1201 = vpow2.f32 %v1104_v32 }
 0xb78   :  { %v1202_v33 = vpop.eup %1201 }
 0xb79   :  { %v933_v34 = vadd.f32 1.0, %v1202_v33  ;;  %v1116_v33 = vld [vmem:[%s1715_s7] ss:$0 sm:$0xff] }
 0xb7b   :  { %1203 = vrcp.f32 %v933_v34  ;;  %v946_v42 = vand.u32 2147483648, %v933_v34  ;;  %v944_v46 = vand.u32 2147483647, %v933_v34  ;;  %vm940_vm14 = vweird.f32 %v933_v34 }
 0xb7c   :  { %1205 = vtanh.f32 %v926_v39 }
 0xb7d   :  { %v947_v6 = vor.u32 1.1754944e-38, %v946_v42  ;;  %vm945_vm0 = vcmp.eq.f32.partialorder %v944_v46, 8.507059e+37  ;;  %1207 = vpow2.f32 %v1105_v8 }
 0xb81   :  { %v1204_v38 = vpop.eup %1203 }
 0xb82   :  { %v936_v40 = vmul.f32 %v1204_v38, %v933_v34  ;;  %vm941_vm13 = vweird.f32 %v1204_v38  ;;  %v1206_v51 = vpop.eup %1205 }
 0xb83   :  { %vm942_vm15 = vmor %vm940_vm14, %vm941_vm13  ;;  %v1208_v2 = vpop.eup %1207 }
 0xb84   :  { %v937_v41 = vsub.f32 1.0, %v936_v40  ;;  %v934_v53 = vadd.f32 1.0, %v1208_v2 }
 0xb86   :  { %v938_v45 = vmul.f32 %v1204_v38, %v937_v41  ;;  %1209 = vrcp.f32 %v934_v53  ;;  %v961_v35 = vand.u32 2147483648, %v934_v53  ;;  %vm955_vm2 = vweird.f32 %v934_v53 }
 0xb87   :  { %v959_v63 = vand.u32 2147483647, %v934_v53 }
 0xb88   :  { %v939_v48 = vadd.f32 %v1204_v38, %v938_v45  ;;  %v962_v55 = vor.u32 1.1754944e-38, %v961_v35 }
 0xb89   :  { %vm960_vm4 = vcmp.eq.f32.partialorder %v959_v63, 8.507059e+37 }
 0xb8a   :  { %v943_v50 = vsel %vm942_vm15, %v1204_v38, %v939_v48 }
 0xb8b   :  { %v948_v57 = vsel %vm945_vm0, %v947_v6, %v943_v50 }
 0xb8c   :  { %v967_v52 = vmul.f32 %v1206_v51, %v948_v57  ;;  %v1210_v9 = vpop.eup %1209  ;;  %v966_v23 = vmul.f32 %v948_v57, %v1662_v20  ;;  %v1020_v20 = vld [vmem:[#allocation4 + $0x38] sm:$0xff] }
 0xb8d   :  { %v951_v12 = vmul.f32 %v1210_v9, %v934_v53  ;;  %vm956_vm1 = vweird.f32 %v1210_v9  ;;  %1041 = vmatpush.msrb.mxu3 %v1020_v20 }
 0xb8e   :  { %969 = vrot.lane.b32.xlu2 %v967_v52, %s1272_s3  ;;  %vm957_vm3 = vmor %vm955_vm2, %vm956_vm1 }
 0xb8f   :  { %v952_v15 = vsub.f32 1.0, %v951_v12  ;;  %1042 = vmatpush.msrb.mxu3 %v1019_v21 }
 0xb91   :  { %v953_v19 = vmul.f32 %v1210_v9, %v952_v15  ;;  %1043 = vmatpush.msrb.mxu3 %v1018_v22 }
 0xb93   :  { %v954_v29 = vadd.f32 %v1210_v9, %v953_v19  ;;  %1044 = vmatpush.msrb.mxu3 %v1017_v24 }
 0xb95   :  { %v958_v54 = vsel %vm957_vm3, %v1210_v9, %v954_v29  ;;  %1045 = vmatpush.msrb.mxu3 %v1016_v26 }
 0xb96   :  { %v963_v56 = vsel %vm960_vm4, %v962_v55, %v958_v54 }
 0xb97   :  { %1046 = vmatpush.msrb.mxu3 %v1015_v27 }
 0xb99   :  { %1047 = vmatpush.msrb.mxu3 %v1014_v61 }
 0xb9b   :  { %1048 = vmatpush.msrb.mxu3 %v1013_v47 }
 0xbe8   :  { %v970_v18 = vpop.permute.xlu2 %969 }
 0xbe9   :  { %v972_v25 = vadd.f32 %v970_v18, %v966_v23 }
 0xbeb   :  { %1211 = vtanh.f32 %v972_v25 }
 0xbf1   :  { %v1212_v44 = vpop.eup %1211 }
 0xbf2   :  { %v974_v58 = vmul.f32 %v1212_v44, %v963_v56 }
 0xbf4   :  { %988 = vrot.lane.b32.xlu0 %v974_v58, %s1272_s3 }
 0xc66   :  { %v989_v49 = vpop.permute.xlu0 %988 }
 0xc67   :  { %1106 = vmatmul.msk.f32.vlgmr.msra.gmra.mxu2 %vm216_vm9, %v989_v49 }
 0xcea   :  { %v1009_v30 = vpop.f32.mrf.mxu2 }
 0xceb   :  { %v1010_v31 = vadd.f32 %v1115_v28, %v1009_v30 }
 0xced   :  { %v1012_v32 = vmax.f32 %v1010_v31, 0.0 }
 0xcef   :  { %1049 = vmatmul.f32.vlgmr.msrb.gmra.mxu3 %v1012_v32 }
 0xd72   :  { %v1050_v34 = vpop.f32.mrf.mxu3 }
 0xd73   :  { %v1051_v36 = vadd.f32 %v1116_v33, %v1050_v34 }
 0xd75   :  { %1053 = vst [vmem:[%s1716_s8] sm:$0xff] %v1051_v36 }
 0xd76   :  { %1058 = vsyncpa [#allocation3], 1 }
 0xd77   :  { %1059 = vsyncpa [#allocation5], 1 }

</bundles_post_ra>
